<compile_context>
chip_gen: v6e
topology: v6e:2x2x1
jax: 0.10.0
libtpu: 0.0.40
codegen_flags: <defaults>
</compile_context>

<pallas_src>
import math

import jax
import jax.numpy as jnp
from jax import lax
from jax.experimental import pallas as pl
from jax.experimental.pallas import tpu as pltpu  # noqa: F401  (kept for TPU-specific tuning hooks)

# ----------------------- model hyper-parameters (small, synthetic) -----------------------
B = 2             # batch
C_IN = 3          # input channels
IMG = 16          # image H == W
PATCH = 8         # conv1 kernel == stride
GRID_HW = IMG // PATCH
N_PATCH = GRID_HW * GRID_HW          # 4
WIDTH = 32                           # transformer width
HEADS = 4
HEAD_DIM = WIDTH // HEADS            # 8
LAYERS = 2                           # visual.transformer.layers
VPT_N_CTX = 2                        # mvlpt_model.vpt_n_ctx
VPT_DIM = 16                         # prompt embedding dim before vpt_proj
OUT_DIM = 16                         # visual.proj output dim
SEQ = 1 + VPT_N_CTX + N_PATCH        # 7 real tokens after VPT insertion
SEQ_PAD = 8                          # padded to one full sublane tile per batch
TOTAL = B * SEQ_PAD                  # 16 resident activation rows
CPP = C_IN * PATCH * PATCH           # 192 flattened patch features
N_DEEP = LAYERS - 1                  # number of deep prompt sets
LN_EPS = 1e-5
NEG_INF = -1e30


# =============================== fused Pallas kernel ===============================

def _ln(x, g, b):
    """Row-wise LayerNorm in f32; var = E[x^2] - mean^2 so the two reduces overlap."""
    mean = jnp.mean(x, axis=-1, keepdims=True)
    msq = jnp.mean(x * x, axis=-1, keepdims=True)
    var = msq - mean * mean
    return (x - mean) * lax.rsqrt(var + LN_EPS) * g + b


def _fused_image_encoder_kernel(
    # -------- inputs (all whole-array VMEM refs; no grid) --------
    patches_ref,                     # (B*N_PATCH, CPP)   flattened conv1 patches
    conv_w_ref,                      # (CPP, WIDTH)       conv1 weight, flattened+transposed
    class_ref,                       # (1, WIDTH)         class_embedding
    pos_ref,                         # (N_PATCH+1, WIDTH) positional_embedding
    ln_pre_g_ref, ln_pre_b_ref,      # (1, WIDTH)
    attn_bias_ref,                   # (TOTAL, TOTAL)  0 within-batch & real key, else -1e30
    prompt_onehot_ref,               # (TOTAL, VPT_N_CTX) one-hot selector for prompt rows
    prompt_mask_ref,                 # (TOTAL, 1)         1 on prompt rows, 0 elsewhere
    vpt_ref,                         # (1+N_DEEP, VPT_N_CTX, VPT_DIM)  [0]=shallow prompts
    vpt_w_ref, vpt_b_ref,            # (VPT_DIM, WIDTH), (1, WIDTH)
    ln1_g_ref, ln1_b_ref,            # (LAYERS, 1, WIDTH)
    qkv_w_ref, qkv_b_ref,            # (LAYERS, WIDTH, 3*WIDTH), (LAYERS, 1, 3*WIDTH)
    o_w_ref, o_b_ref,                # (LAYERS, WIDTH, WIDTH), (LAYERS, 1, WIDTH)
    ln2_g_ref, ln2_b_ref,            # (LAYERS, 1, WIDTH)
    fc_w_ref, fc_b_ref,              # (LAYERS, WIDTH, 4*WIDTH), (LAYERS, 1, 4*WIDTH)
    cproj_w_ref, cproj_b_ref,        # (LAYERS, 4*WIDTH, WIDTH), (LAYERS, 1, WIDTH)
    ln_post_g_ref, ln_post_b_ref,    # (1, WIDTH)
    proj_ref,                        # (WIDTH, OUT_DIM)
    # -------- output --------
    out_ref,                         # (B, OUT_DIM)
):
    f32 = jnp.float32
    ln_pre_g = ln_pre_g_ref[...]
    ln_pre_b = ln_pre_b_ref[...]
    vpt_w = vpt_w_ref[...]
    vpt_b = vpt_b_ref[...]

    # ---- conv1 (kernel == stride patchify) as a single matmul; CLS + positional; ln_pre ----
    patch_emb = jnp.dot(patches_ref[...], conv_w_ref[...], preferred_element_type=f32)  # (B*NP, W)
    cls_tok = _ln(class_ref[...] + pos_ref[0:1, :], ln_pre_g, ln_pre_b)                 # (1, W)
    pos_patch = pos_ref[1:1 + N_PATCH, :]                                               # (NP, W)
    pos_all = jnp.concatenate([pos_patch] * B, axis=0)                                  # (B*NP, W)
    patch_rows = _ln(patch_emb + pos_all, ln_pre_g, ln_pre_b)                           # (B*NP, W)

    # shallow VPT prompts: vpt_proj(vpt_embeddings); inserted after CLS, NOT ln_pre'd
    # (forward_vpt runs after ln_pre in the reference; vpt_dropout is eval-mode identity).
    ctx0 = jnp.dot(vpt_ref[0], vpt_w, preferred_element_type=f32) + vpt_b               # (n_ctx, W)
    pad = jnp.zeros((SEQ_PAD - SEQ, WIDTH), f32)                                        # dead row

    slabs = []
    for b in range(B):
        slabs += [cls_tok, ctx0, patch_rows[b * N_PATCH:(b + 1) * N_PATCH, :], pad]
    x = jnp.concatenate(slabs, axis=0)                                                  # (TOTAL, W)

    attn_bias = attn_bias_ref[...]          # keeps B sequences independent & hides the pad row
    prompt_onehot = prompt_onehot_ref[...]
    prompt_mask = prompt_mask_ref[...]

    # ---- transformer with deep VPT; control flow mirrors the reference exactly ----
    for li in range(LAYERS):
        if li == 0:
            pass
        elif li <= N_DEEP:
            # replace the prompt rows with this layer's projected deep prompts
            dctx = jnp.dot(vpt_ref[li], vpt_w, preferred_element_type=f32) + vpt_b      # (n_ctx, W)
            dctx_rows = jnp.dot(prompt_onehot, dctx, preferred_element_type=f32)        # (TOTAL, W)
            x = prompt_mask * dctx_rows + (1.0 - prompt_mask) * x
        else:
            # reference skips the whole residual block for layer_idx > n_deep
            continue

        # ----- attention branch: one fused in_proj, per-head score/pv, one out_proj -----
        h = _ln(x, ln1_g_ref[li], ln1_b_ref[li])
        qkv = jnp.dot(h, qkv_w_ref[li], preferred_element_type=f32) + qkv_b_ref[li]     # (T, 3W)
        head_outs = []
        for hh in range(HEADS):
            lo = hh * HEAD_DIM
            qh = qkv[:, lo:lo + HEAD_DIM]
            kh = qkv[:, WIDTH + lo:WIDTH + lo + HEAD_DIM]
            vh = qkv[:, 2 * WIDTH + lo:2 * WIDTH + lo + HEAD_DIM]
            # scores over all B*SEQ_PAD rows; cross-batch and pad-row keys masked by attn_bias
            s = lax.dot_general(qh, kh, (((1,), (1,)), ((), ())),
                                preferred_element_type=f32) + attn_bias                 # (T, T)
            s = s - jnp.max(s, axis=-1, keepdims=True)
            p = jnp.exp(s)
            p = p / jnp.sum(p, axis=-1, keepdims=True)                                   # exact
            head_outs.append(jnp.dot(p, vh, preferred_element_type=f32))                # (T, Dh)
        attn_cat = jnp.concatenate(head_outs, axis=-1)                                  # (T, W)
        x = x + jnp.dot(attn_cat, o_w_ref[li], preferred_element_type=f32) + o_b_ref[li]

        # ----- MLP branch (QuickGELU) -----
        h = _ln(x, ln2_g_ref[li], ln2_b_ref[li])
        h = jnp.dot(h, fc_w_ref[li], preferred_element_type=f32) + fc_b_ref[li]
        h = h * jax.nn.sigmoid(1.702 * h)
        x = x + jnp.dot(h, cproj_w_ref[li], preferred_element_type=f32) + cproj_b_ref[li]

    # ---- batched epilogue: gather CLS rows, one ln_post, one proj matmul, one store ----
    cls_rows = jnp.concatenate([x[b * SEQ_PAD:b * SEQ_PAD + 1, :] for b in range(B)], axis=0)
    cls_out = _ln(cls_rows, ln_post_g_ref[...], ln_post_b_ref[...])                     # (B, W)
    out_ref[...] = jnp.dot(cls_out, proj_ref[...],
                           preferred_element_type=f32).astype(out_ref.dtype)


# =============================== forward wrapper ===============================

def image_encoder_forward(x_img, pk):
    """x_img: NCHW (B, C, H, W), exactly like the PyTorch conv1 input."""
    Bn, C, H, W = x_img.shape
    assert (Bn, C, H, W) == (B, C_IN, IMG, IMG)
    # conv1 patchify is pure layout glue (reshape/transpose); the matmul happens in-kernel.
    patches = x_img.reshape(Bn, C, GRID_HW, PATCH, GRID_HW, PATCH)
    patches = patches.transpose(0, 2, 4, 1, 3, 5).reshape(Bn * N_PATCH, CPP)

    return pl.pallas_call(
        _fused_image_encoder_kernel,
        out_shape=jax.ShapeDtypeStruct((Bn, OUT_DIM), jnp.float32),
    )(
        patches,
        pk["conv_w"], pk["class_emb"], pk["pos_emb"],
        pk["ln_pre_g"], pk["ln_pre_b"],
        pk["attn_bias"], pk["prompt_onehot"], pk["prompt_mask"],
        pk["vpt_all"], pk["vpt_w"], pk["vpt_b"],
        pk["ln1_g"], pk["ln1_b"],
        pk["qkv_w"], pk["qkv_b"],
        pk["o_w"], pk["o_b"],
        pk["ln2_g"], pk["ln2_b"],
        pk["fc_w"], pk["fc_b"], pk["cproj_w"], pk["cproj_b"],
        pk["ln_post_g"], pk["ln_post_b"], pk["proj"],
    )


# =============================== one-time parameter packing ===============================

def pack_params(p):
    """One-time repacking (hoisted out of the forward pass):
       - all weights pre-transposed to (in_features, out_features),
       - per-layer tensors stacked along a leading layer axis,
       - Q/K/V fused into one (WIDTH, 3*WIDTH) in_proj per layer, 1/sqrt(head_dim) folded
         into the Q third; out_proj kept as a single (WIDTH, WIDTH) matmul,
       - 1-D vectors reshaped to (1, N) rows,
       - block-diagonal (pad-aware) attention bias and prompt-row selectors precomputed."""
    L = LAYERS
    scale = 1.0 / math.sqrt(HEAD_DIM)

    def stk(fn):
        return jnp.stack([fn(p["layers"][li]) for li in range(L)], axis=0)

    def fused_qkv_w(lp):
        w = lp["in_proj_w"].T                              # (W, 3W), cols = [Q | K | V]
        return jnp.concatenate([w[:, :WIDTH] * scale, w[:, WIDTH:]], axis=-1)

    def fused_qkv_b(lp):
        bv = lp["in_proj_b"]
        return jnp.concatenate([bv[:WIDTH] * scale, bv[WIDTH:]]).reshape(1, 3 * WIDTH)

    row = jnp.arange(TOTAL)
    row_batch = row // SEQ_PAD
    pos_in_seq = row % SEQ_PAD
    key_real = pos_in_seq < SEQ
    attn_bias = jnp.where((row_batch[:, None] == row_batch[None, :]) & key_real[None, :],
                          0.0, NEG_INF)
    is_prompt = (pos_in_seq >= 1) & (pos_in_seq <= VPT_N_CTX)
    prompt_onehot = (is_prompt[:, None]
                     & ((pos_in_seq[:, None] - 1) == jnp.arange(VPT_N_CTX)[None, :])
                     ).astype(jnp.float32)                                  # (TOTAL, n_ctx)
    prompt_mask = prompt_onehot.sum(axis=-1, keepdims=True)                 # (TOTAL, 1)

    vpt_shallow = p["vpt_embeddings"].reshape(VPT_N_CTX, VPT_DIM)
    vpt_all = jnp.concatenate([vpt_shallow[None], p["vpt_embeddings_deep"]], axis=0)

    pk = {
        "conv_w": p["conv1_w"].reshape(WIDTH, CPP).T,
        "class_emb": p["class_embedding"].reshape(1, WIDTH),
        "pos_emb": p["positional_embedding"],
        "ln_pre_g": p["ln_pre_g"].reshape(1, WIDTH),
        "ln_pre_b": p["ln_pre_b"].reshape(1, WIDTH),
        "attn_bias": attn_bias,
        "prompt_onehot": prompt_onehot,
        "prompt_mask": prompt_mask,
        "vpt_all": vpt_all,
        "vpt_w": p["vpt_proj_w"].T,
        "vpt_b": p["vpt_proj_b"].reshape(1, WIDTH),
        "ln1_g": stk(lambda l: l["ln1_g"]).reshape(L, 1, WIDTH),
        "ln1_b": stk(lambda l: l["ln1_b"]).reshape(L, 1, WIDTH),
        "qkv_w": stk(fused_qkv_w),                       # (L, W, 3W)
        "qkv_b": stk(fused_qkv_b),                       # (L, 1, 3W)
        "o_w": stk(lambda l: l["out_proj_w"].T),         # (L, W, W)
        "o_b": stk(lambda l: l["out_proj_b"]).reshape(L, 1, WIDTH),
        "ln2_g": stk(lambda l: l["ln2_g"]).reshape(L, 1, WIDTH),
        "ln2_b": stk(lambda l: l["ln2_b"]).reshape(L, 1, WIDTH),
        "fc_w": stk(lambda l: l["fc_w"].T),
        "fc_b": stk(lambda l: l["fc_b"]).reshape(L, 1, 4 * WIDTH),
        "cproj_w": stk(lambda l: l["cproj_w"].T),
        "cproj_b": stk(lambda l: l["cproj_b"]).reshape(L, 1, WIDTH),
        "ln_post_g": p["ln_post_g"].reshape(1, WIDTH),
        "ln_post_b": p["ln_post_b"].reshape(1, WIDTH),
        "proj": p["proj"],
    }
    return jax.tree_util.tree_map(lambda a: a.astype(jnp.float32), pk)


# =============================== PyTorch-layout parameters ===============================

def init_params(key):
    keys = jax.random.split(key, 8)

    def nrm(k, shape, s=0.02):
        return jax.random.normal(k, shape, jnp.float32) * s

    params = {
        "conv1_w": nrm(keys[0], (WIDTH, C_IN, PATCH, PATCH)),
        "class_embedding": nrm(keys[1], (WIDTH,)),
        "positional_embedding": nrm(keys[2], (N_PATCH + 1, WIDTH)),
        "ln_pre_g": jnp.ones((WIDTH,), jnp.float32),
        "ln_pre_b": jnp.zeros((WIDTH,), jnp.float32),
        "vpt_embeddings": nrm(keys[3], (1, VPT_N_CTX, VPT_DIM)),
        "vpt_embeddings_deep": nrm(keys[4], (LAYERS - 1, VPT_N_CTX, VPT_DIM)),
        "vpt_proj_w": nrm(keys[5], (WIDTH, VPT_DIM)),
        "vpt_proj_b": jnp.zeros((WIDTH,), jnp.float32),
        "ln_post_g": jnp.ones((WIDTH,), jnp.float32),
        "ln_post_b": jnp.zeros((WIDTH,), jnp.float32),
        "proj": nrm(keys[6], (WIDTH, OUT_DIM)),
        "layers": [],
    }
    for li in range(LAYERS):
        k = jax.random.split(jax.random.fold_in(keys[7], li), 4)
        params["layers"].append({
            "ln1_g": jnp.ones((WIDTH,), jnp.float32),
            "ln1_b": jnp.zeros((WIDTH,), jnp.float32),
            "in_proj_w": nrm(k[0], (3 * WIDTH, WIDTH)),
            "in_proj_b": jnp.zeros((3 * WIDTH,), jnp.float32),
            "out_proj_w": nrm(k[1], (WIDTH, WIDTH)),
            "out_proj_b": jnp.zeros((WIDTH,), jnp.float32),
            "ln2_g": jnp.ones((WIDTH,), jnp.float32),
            "ln2_b": jnp.zeros((WIDTH,), jnp.float32),
            "fc_w": nrm(k[2], (4 * WIDTH, WIDTH)),
            "fc_b": jnp.zeros((4 * WIDTH,), jnp.float32),
            "cproj_w": nrm(k[3], (WIDTH, 4 * WIDTH)),
            "cproj_b": jnp.zeros((WIDTH,), jnp.float32),
        })
    return params


# =============================== pure-JAX reference (for validation) ===============================

def reference_forward(x_img, p):
    Bn = x_img.shape[0]
    patches = x_img.reshape(Bn, C_IN, GRID_HW, PATCH, GRID_HW, PATCH)
    patches = patches.transpose(0, 2, 4, 1, 3, 5).reshape(Bn * N_PATCH, CPP)
    x = (patches @ p["conv1_w"].reshape(WIDTH, CPP).T).reshape(Bn, N_PATCH, WIDTH)
    cls = jnp.broadcast_to(p["class_embedding"][None, None], (Bn, 1, WIDTH))
    x = jnp.concatenate([cls, x], axis=1) + p["positional_embedding"][None]

    def ln(t, g, b):
        m = t.mean(-1, keepdims=True)
        v = ((t - m) ** 2).mean(-1, keepdims=True)
        return (t - m) * lax.rsqrt(v + LN_EPS) * g + b

    x = ln(x, p["ln_pre_g"], p["ln_pre_b"])
    ctx = p["vpt_embeddings"].reshape(VPT_N_CTX, VPT_DIM) @ p["vpt_proj_w"].T + p["vpt_proj_b"]
    ctx = jnp.broadcast_to(ctx[None], (Bn, VPT_N_CTX, WIDTH))
    x = jnp.concatenate([x[:, :1], ctx, x[:, 1:]], axis=1)

    n_deep = p["vpt_embeddings_deep"].shape[0]
    for li in range(LAYERS):
        lp = p["layers"][li]
        if li == 0:
            pass
        elif li <= n_deep:
            dctx = p["vpt_embeddings_deep"][li - 1] @ p["vpt_proj_w"].T + p["vpt_proj_b"]
            dctx = jnp.broadcast_to(dctx[None], (Bn, VPT_N_CTX, WIDTH))
            x = jnp.concatenate([x[:, :1], dctx, x[:, 1 + VPT_N_CTX:]], axis=1)
        else:
            continue
        h = ln(x, lp["ln1_g"], lp["ln1_b"])
        qkv = h @ lp["in_proj_w"].T + lp["in_proj_b"]
        q, k, v = jnp.split(qkv, 3, axis=-1)

        def heads(t):
            return t.reshape(Bn, SEQ, HEADS, HEAD_DIM).transpose(0, 2, 1, 3)

        q, k, v = heads(q), heads(k), heads(v)
        s = jnp.einsum("bhqd,bhkd->bhqk", q, k) / math.sqrt(HEAD_DIM)
        pm = jax.nn.softmax(s, axis=-1)
        o = jnp.einsum("bhqk,bhkd->bhqd", pm, v).transpose(0, 2, 1, 3).reshape(Bn, SEQ, WIDTH)
        x = x + (o @ lp["out_proj_w"].T + lp["out_proj_b"])
        h = ln(x, lp["ln2_g"], lp["ln2_b"])
        h = h @ lp["fc_w"].T + lp["fc_b"]
        h = h * jax.nn.sigmoid(1.702 * h)
        x = x + (h @ lp["cproj_w"].T + lp["cproj_b"])

    cls_out = ln(x[:, 0], p["ln_post_g"], p["ln_post_b"])
    return cls_out @ p["proj"]


if __name__ == "__main__":
    key = jax.random.PRNGKey(0)
    pkey, xkey = jax.random.split(key)
    params = init_params(pkey)
    packed = pack_params(params)   # one-time packing: transposes/stacking hoisted out of forward
    x_img = jax.random.normal(xkey, (B, C_IN, IMG, IMG), jnp.float32)

    fwd = jax.jit(image_encoder_forward)
    out = fwd(x_img, packed)
    jax.block_until_ready(out)

    assert out.shape == (B, OUT_DIM), out.shape
    assert bool(jnp.all(jnp.isfinite(out)))

    # validate against a pure-JAX reference (exact-softmax kernel -> tight tolerance)
    ref = reference_forward(x_img, params)
    assert jnp.allclose(out, ref, rtol=2e-3, atol=2e-4), float(jnp.max(jnp.abs(out - ref)))

    print("KERNEL_OK")
</pallas_src>

<mosaic_0001>
module attributes {stable_mosaic.version = 11 : i64} {
  func.func @_fused_image_encoder_kernel(%arg0: memref<8x192xf32, #tpu.memory_space<vmem>>, %arg1: memref<192x32xf32, #tpu.memory_space<vmem>>, %arg2: memref<1x32xf32, #tpu.memory_space<vmem>>, %arg3: memref<5x32xf32, #tpu.memory_space<vmem>>, %arg4: memref<1x32xf32, #tpu.memory_space<vmem>>, %arg5: memref<1x32xf32, #tpu.memory_space<vmem>>, %arg6: memref<16x16xf32, #tpu.memory_space<vmem>>, %arg7: memref<16x2xf32, #tpu.memory_space<vmem>>, %arg8: memref<16x1xf32, #tpu.memory_space<vmem>>, %arg9: memref<2x2x16xf32, #tpu.memory_space<vmem>>, %arg10: memref<16x32xf32, #tpu.memory_space<vmem>>, %arg11: memref<1x32xf32, #tpu.memory_space<vmem>>, %arg12: memref<2x1x32xf32, #tpu.memory_space<vmem>>, %arg13: memref<2x1x32xf32, #tpu.memory_space<vmem>>, %arg14: memref<2x32x96xf32, #tpu.memory_space<vmem>>, %arg15: memref<2x1x96xf32, #tpu.memory_space<vmem>>, %arg16: memref<2x32x32xf32, #tpu.memory_space<vmem>>, %arg17: memref<2x1x32xf32, #tpu.memory_space<vmem>>, %arg18: memref<2x1x32xf32, #tpu.memory_space<vmem>>, %arg19: memref<2x1x32xf32, #tpu.memory_space<vmem>>, %arg20: memref<2x32x128xf32, #tpu.memory_space<vmem>>, %arg21: memref<2x1x128xf32, #tpu.memory_space<vmem>>, %arg22: memref<2x128x32xf32, #tpu.memory_space<vmem>>, %arg23: memref<2x1x32xf32, #tpu.memory_space<vmem>>, %arg24: memref<1x32xf32, #tpu.memory_space<vmem>>, %arg25: memref<1x32xf32, #tpu.memory_space<vmem>>, %arg26: memref<32x16xf32, #tpu.memory_space<vmem>>, %arg27: memref<2x16xf32, #tpu.memory_space<vmem>>) attributes {dimension_semantics = [], scalar_prefetch = 0 : i64, scratch_operands = 0 : i64, tpu.core_type = #tpu.core_type<tc>} {
    %c0 = arith.constant 0 : index
    %c0_0 = arith.constant 0 : index
    %0 = vector.load %arg4[%c0, %c0_0] : memref<1x32xf32, #tpu.memory_space<vmem>>, vector<1x32xf32>
    %c0_1 = arith.constant 0 : index
    %c0_2 = arith.constant 0 : index
    %1 = vector.load %arg5[%c0_1, %c0_2] : memref<1x32xf32, #tpu.memory_space<vmem>>, vector<1x32xf32>
    %c0_3 = arith.constant 0 : index
    %c0_4 = arith.constant 0 : index
    %2 = vector.load %arg10[%c0_3, %c0_4] : memref<16x32xf32, #tpu.memory_space<vmem>>, vector<16x32xf32>
    %c0_5 = arith.constant 0 : index
    %c0_6 = arith.constant 0 : index
    %3 = vector.load %arg11[%c0_5, %c0_6] : memref<1x32xf32, #tpu.memory_space<vmem>>, vector<1x32xf32>
    %c0_7 = arith.constant 0 : index
    %c0_8 = arith.constant 0 : index
    %4 = vector.load %arg0[%c0_7, %c0_8] : memref<8x192xf32, #tpu.memory_space<vmem>>, vector<8x192xf32>
    %c0_9 = arith.constant 0 : index
    %c0_10 = arith.constant 0 : index
    %5 = vector.load %arg1[%c0_9, %c0_10] : memref<192x32xf32, #tpu.memory_space<vmem>>, vector<192x32xf32>
    %cst = arith.constant dense<0.000000e+00> : vector<8x32xf32>
    %6 = tpu.matmul %4, %5, %cst {dimension_numbers = #tpu.dot_dimension_numbers<[1], [0], [0], [1], [0, 0, 1, 1], [], []>} : vector<8x192xf32>, vector<192x32xf32>, vector<8x32xf32> -> vector<8x32xf32>
    %c0_11 = arith.constant 0 : index
    %c0_12 = arith.constant 0 : index
    %7 = vector.load %arg2[%c0_11, %c0_12] : memref<1x32xf32, #tpu.memory_space<vmem>>, vector<1x32xf32>
    %c0_13 = arith.constant 0 : index
    %c0_14 = arith.constant 0 : index
    %8 = vector.load %arg3[%c0_13, %c0_14] : memref<5x32xf32, #tpu.memory_space<vmem>>, vector<1x32xf32>
    %9 = arith.addf %7, %8 : vector<1x32xf32>
    %cst_15 = arith.constant dense<0.000000e+00> : vector<1xf32>
    %10 = vector.multi_reduction <add>, %9, %cst_15 [1] : vector<1x32xf32> to vector<1xf32>
    %11 = vector.shape_cast %10 : vector<1xf32> to vector<1x1xf32>
    %cst_16 = arith.constant 3.200000e+01 : f32
    %12 = vector.broadcast %cst_16 : f32 to vector<1x1xf32>
    %13 = arith.divf %11, %12 : vector<1x1xf32>
    %14 = arith.mulf %9, %9 : vector<1x32xf32>
    %cst_17 = arith.constant dense<0.000000e+00> : vector<1xf32>
    %15 = vector.multi_reduction <add>, %14, %cst_17 [1] : vector<1x32xf32> to vector<1xf32>
    %16 = vector.shape_cast %15 : vector<1xf32> to vector<1x1xf32>
    %cst_18 = arith.constant 3.200000e+01 : f32
    %17 = vector.broadcast %cst_18 : f32 to vector<1x1xf32>
    %18 = arith.divf %16, %17 : vector<1x1xf32>
    %19 = arith.mulf %13, %13 : vector<1x1xf32>
    %20 = arith.subf %18, %19 : vector<1x1xf32>
    %21 = vector.broadcast %13 : vector<1x1xf32> to vector<1x32xf32>
    %22 = arith.subf %9, %21 : vector<1x32xf32>
    %cst_19 = arith.constant 9.99999974E-6 : f32
    %23 = vector.broadcast %cst_19 : f32 to vector<1x1xf32>
    %24 = arith.addf %20, %23 : vector<1x1xf32>
    %25 = math.rsqrt %24 : vector<1x1xf32>
    %26 = vector.broadcast %25 : vector<1x1xf32> to vector<1x32xf32>
    %27 = arith.mulf %22, %26 : vector<1x32xf32>
    %28 = arith.mulf %27, %0 : vector<1x32xf32>
    %29 = arith.addf %28, %1 : vector<1x32xf32>
    %c1 = arith.constant 1 : index
    %c0_20 = arith.constant 0 : index
    %30 = vector.load %arg3[%c1, %c0_20] : memref<5x32xf32, #tpu.memory_space<vmem>>, vector<4x32xf32>
    %31 = tpu.concatenate %30, %30 in 0 : vector<4x32xf32>, vector<4x32xf32> -> vector<8x32xf32>
    %32 = arith.addf %6, %31 : vector<8x32xf32>
    %cst_21 = arith.constant dense<0.000000e+00> : vector<8xf32>
    %33 = vector.multi_reduction <add>, %32, %cst_21 [1] : vector<8x32xf32> to vector<8xf32>
    %34 = vector.shape_cast %33 : vector<8xf32> to vector<8x1xf32>
    %cst_22 = arith.constant 3.200000e+01 : f32
    %35 = vector.broadcast %cst_22 : f32 to vector<8x1xf32>
    %36 = arith.divf %34, %35 : vector<8x1xf32>
    %37 = arith.mulf %32, %32 : vector<8x32xf32>
    %cst_23 = arith.constant dense<0.000000e+00> : vector<8xf32>
    %38 = vector.multi_reduction <add>, %37, %cst_23 [1] : vector<8x32xf32> to vector<8xf32>
    %39 = vector.shape_cast %38 : vector<8xf32> to vector<8x1xf32>
    %cst_24 = arith.constant 3.200000e+01 : f32
    %40 = vector.broadcast %cst_24 : f32 to vector<8x1xf32>
    %41 = arith.divf %39, %40 : vector<8x1xf32>
    %42 = arith.mulf %36, %36 : vector<8x1xf32>
    %43 = arith.subf %41, %42 : vector<8x1xf32>
    %44 = vector.broadcast %36 : vector<8x1xf32> to vector<8x32xf32>
    %45 = arith.subf %32, %44 : vector<8x32xf32>
    %cst_25 = arith.constant 9.99999974E-6 : f32
    %46 = vector.broadcast %cst_25 : f32 to vector<8x1xf32>
    %47 = arith.addf %43, %46 : vector<8x1xf32>
    %48 = math.rsqrt %47 : vector<8x1xf32>
    %49 = vector.broadcast %48 : vector<8x1xf32> to vector<8x32xf32>
    %50 = arith.mulf %45, %49 : vector<8x32xf32>
    %51 = vector.broadcast %0 : vector<1x32xf32> to vector<8x32xf32>
    %52 = arith.mulf %50, %51 : vector<8x32xf32>
    %53 = vector.broadcast %1 : vector<1x32xf32> to vector<8x32xf32>
    %54 = arith.addf %52, %53 : vector<8x32xf32>
    %c0_26 = arith.constant 0 : index
    %c0_27 = arith.constant 0 : index
    %c0_28 = arith.constant 0 : index
    %55 = vector.load %arg9[%c0_26, %c0_27, %c0_28] : memref<2x2x16xf32, #tpu.memory_space<vmem>>, vector<1x2x16xf32>
    %56 = vector.shape_cast %55 : vector<1x2x16xf32> to vector<2x16xf32>
    %cst_29 = arith.constant dense<0.000000e+00> : vector<2x32xf32>
    %57 = tpu.matmul %56, %2, %cst_29 {dimension_numbers = #tpu.dot_dimension_numbers<[1], [0], [0], [1], [0, 0, 1, 1], [], []>} : vector<2x16xf32>, vector<16x32xf32>, vector<2x32xf32> -> vector<2x32xf32>
    %58 = vector.broadcast %3 : vector<1x32xf32> to vector<2x32xf32>
    %59 = arith.addf %57, %58 : vector<2x32xf32>
    %cst_30 = arith.constant 0.000000e+00 : f32
    %60 = vector.broadcast %cst_30 : f32 to vector<1x32xf32>
    %61 = vector.extract_strided_slice %54 {offsets = [0, 0], sizes = [4, 32], strides = [1, 1]} : vector<8x32xf32> to vector<4x32xf32>
    %62 = vector.extract_strided_slice %54 {offsets = [4, 0], sizes = [4, 32], strides = [1, 1]} : vector<8x32xf32> to vector<4x32xf32>
    %63 = tpu.concatenate %29, %59, %61, %60, %29, %59, %62, %60 in 0 : vector<1x32xf32>, vector<2x32xf32>, vector<4x32xf32>, vector<1x32xf32>, vector<1x32xf32>, vector<2x32xf32>, vector<4x32xf32>, vector<1x32xf32> -> vector<16x32xf32>
    %c0_31 = arith.constant 0 : index
    %c0_32 = arith.constant 0 : index
    %64 = vector.load %arg6[%c0_31, %c0_32] : memref<16x16xf32, #tpu.memory_space<vmem>>, vector<16x16xf32>
    %c0_33 = arith.constant 0 : index
    %c0_34 = arith.constant 0 : index
    %65 = vector.load %arg7[%c0_33, %c0_34] : memref<16x2xf32, #tpu.memory_space<vmem>>, vector<16x2xf32>
    %c0_35 = arith.constant 0 : index
    %c0_36 = arith.constant 0 : index
    %66 = vector.load %arg8[%c0_35, %c0_36] : memref<16x1xf32, #tpu.memory_space<vmem>>, vector<16x1xf32>
    %c0_37 = arith.constant 0 : index
    %c0_38 = arith.constant 0 : index
    %c0_39 = arith.constant 0 : index
    %67 = vector.load %arg12[%c0_37, %c0_38, %c0_39] : memref<2x1x32xf32, #tpu.memory_space<vmem>>, vector<1x1x32xf32>
    %68 = vector.shape_cast %67 : vector<1x1x32xf32> to vector<1x32xf32>
    %c0_40 = arith.constant 0 : index
    %c0_41 = arith.constant 0 : index
    %c0_42 = arith.constant 0 : index
    %69 = vector.load %arg13[%c0_40, %c0_41, %c0_42] : memref<2x1x32xf32, #tpu.memory_space<vmem>>, vector<1x1x32xf32>
    %70 = vector.shape_cast %69 : vector<1x1x32xf32> to vector<1x32xf32>
    %cst_43 = arith.constant dense<0.000000e+00> : vector<16xf32>
    %71 = vector.multi_reduction <add>, %63, %cst_43 [1] : vector<16x32xf32> to vector<16xf32>
    %72 = vector.shape_cast %71 : vector<16xf32> to vector<16x1xf32>
    %cst_44 = arith.constant 3.200000e+01 : f32
    %73 = vector.broadcast %cst_44 : f32 to vector<16x1xf32>
    %74 = arith.divf %72, %73 : vector<16x1xf32>
    %75 = arith.mulf %63, %63 : vector<16x32xf32>
    %cst_45 = arith.constant dense<0.000000e+00> : vector<16xf32>
    %76 = vector.multi_reduction <add>, %75, %cst_45 [1] : vector<16x32xf32> to vector<16xf32>
    %77 = vector.shape_cast %76 : vector<16xf32> to vector<16x1xf32>
    %cst_46 = arith.constant 3.200000e+01 : f32
    %78 = vector.broadcast %cst_46 : f32 to vector<16x1xf32>
    %79 = arith.divf %77, %78 : vector<16x1xf32>
    %80 = arith.mulf %74, %74 : vector<16x1xf32>
    %81 = arith.subf %79, %80 : vector<16x1xf32>
    %82 = vector.broadcast %74 : vector<16x1xf32> to vector<16x32xf32>
    %83 = arith.subf %63, %82 : vector<16x32xf32>
    %cst_47 = arith.constant 9.99999974E-6 : f32
    %84 = vector.broadcast %cst_47 : f32 to vector<16x1xf32>
    %85 = arith.addf %81, %84 : vector<16x1xf32>
    %86 = math.rsqrt %85 : vector<16x1xf32>
    %87 = vector.broadcast %86 : vector<16x1xf32> to vector<16x32xf32>
    %88 = arith.mulf %83, %87 : vector<16x32xf32>
    %89 = vector.broadcast %68 : vector<1x32xf32> to vector<16x32xf32>
    %90 = arith.mulf %88, %89 : vector<16x32xf32>
    %91 = vector.broadcast %70 : vector<1x32xf32> to vector<16x32xf32>
    %92 = arith.addf %90, %91 : vector<16x32xf32>
    %c0_48 = arith.constant 0 : index
    %c0_49 = arith.constant 0 : index
    %c0_50 = arith.constant 0 : index
    %93 = vector.load %arg14[%c0_48, %c0_49, %c0_50] : memref<2x32x96xf32, #tpu.memory_space<vmem>>, vector<1x32x96xf32>
    %94 = vector.shape_cast %93 : vector<1x32x96xf32> to vector<32x96xf32>
    %cst_51 = arith.constant dense<0.000000e+00> : vector<16x96xf32>
    %95 = tpu.matmul %92, %94, %cst_51 {dimension_numbers = #tpu.dot_dimension_numbers<[1], [0], [0], [1], [0, 0, 1, 1], [], []>} : vector<16x32xf32>, vector<32x96xf32>, vector<16x96xf32> -> vector<16x96xf32>
    %c0_52 = arith.constant 0 : index
    %c0_53 = arith.constant 0 : index
    %c0_54 = arith.constant 0 : index
    %96 = vector.load %arg15[%c0_52, %c0_53, %c0_54] : memref<2x1x96xf32, #tpu.memory_space<vmem>>, vector<1x1x96xf32>
    %97 = vector.shape_cast %96 : vector<1x1x96xf32> to vector<1x96xf32>
    %98 = vector.broadcast %97 : vector<1x96xf32> to vector<16x96xf32>
    %99 = arith.addf %95, %98 : vector<16x96xf32>
    %100 = vector.extract_strided_slice %99 {offsets = [0, 0], sizes = [16, 8], strides = [1, 1]} : vector<16x96xf32> to vector<16x8xf32>
    %101 = vector.extract_strided_slice %99 {offsets = [0, 32], sizes = [16, 8], strides = [1, 1]} : vector<16x96xf32> to vector<16x8xf32>
    %102 = vector.extract_strided_slice %99 {offsets = [0, 64], sizes = [16, 8], strides = [1, 1]} : vector<16x96xf32> to vector<16x8xf32>
    %cst_55 = arith.constant dense<0.000000e+00> : vector<16x16xf32>
    %103 = tpu.matmul %100, %101, %cst_55 {dimension_numbers = #tpu.dot_dimension_numbers<[1], [1], [0], [0], [0, 0, 1, 0], [], []>} : vector<16x8xf32>, vector<16x8xf32>, vector<16x16xf32> -> vector<16x16xf32>
    %104 = arith.addf %103, %64 : vector<16x16xf32>
    %cst_56 = arith.constant dense<0xFF800000> : vector<16xf32>
    %105 = vector.multi_reduction <maximumf>, %104, %cst_56 [1] : vector<16x16xf32> to vector<16xf32>
    %106 = vector.shape_cast %105 : vector<16xf32> to vector<16x1xf32>
    %107 = vector.broadcast %106 : vector<16x1xf32> to vector<16x16xf32>
    %108 = arith.subf %104, %107 : vector<16x16xf32>
    %109 = math.exp %108 : vector<16x16xf32>
    %cst_57 = arith.constant dense<0.000000e+00> : vector<16xf32>
    %110 = vector.multi_reduction <add>, %109, %cst_57 [1] : vector<16x16xf32> to vector<16xf32>
    %111 = vector.shape_cast %110 : vector<16xf32> to vector<16x1xf32>
    %112 = vector.broadcast %111 : vector<16x1xf32> to vector<16x16xf32>
    %113 = arith.divf %109, %112 : vector<16x16xf32>
    %cst_58 = arith.constant dense<0.000000e+00> : vector<16x8xf32>
    %114 = tpu.matmul %113, %102, %cst_58 {dimension_numbers = #tpu.dot_dimension_numbers<[1], [0], [0], [1], [0, 0, 1, 1], [], []>} : vector<16x16xf32>, vector<16x8xf32>, vector<16x8xf32> -> vector<16x8xf32>
    %115 = vector.extract_strided_slice %99 {offsets = [0, 8], sizes = [16, 8], strides = [1, 1]} : vector<16x96xf32> to vector<16x8xf32>
    %116 = vector.extract_strided_slice %99 {offsets = [0, 40], sizes = [16, 8], strides = [1, 1]} : vector<16x96xf32> to vector<16x8xf32>
    %117 = vector.extract_strided_slice %99 {offsets = [0, 72], sizes = [16, 8], strides = [1, 1]} : vector<16x96xf32> to vector<16x8xf32>
    %cst_59 = arith.constant dense<0.000000e+00> : vector<16x16xf32>
    %118 = tpu.matmul %115, %116, %cst_59 {dimension_numbers = #tpu.dot_dimension_numbers<[1], [1], [0], [0], [0, 0, 1, 0], [], []>} : vector<16x8xf32>, vector<16x8xf32>, vector<16x16xf32> -> vector<16x16xf32>
    %119 = arith.addf %118, %64 : vector<16x16xf32>
    %cst_60 = arith.constant dense<0xFF800000> : vector<16xf32>
    %120 = vector.multi_reduction <maximumf>, %119, %cst_60 [1] : vector<16x16xf32> to vector<16xf32>
    %121 = vector.shape_cast %120 : vector<16xf32> to vector<16x1xf32>
    %122 = vector.broadcast %121 : vector<16x1xf32> to vector<16x16xf32>
    %123 = arith.subf %119, %122 : vector<16x16xf32>
    %124 = math.exp %123 : vector<16x16xf32>
    %cst_61 = arith.constant dense<0.000000e+00> : vector<16xf32>
    %125 = vector.multi_reduction <add>, %124, %cst_61 [1] : vector<16x16xf32> to vector<16xf32>
    %126 = vector.shape_cast %125 : vector<16xf32> to vector<16x1xf32>
    %127 = vector.broadcast %126 : vector<16x1xf32> to vector<16x16xf32>
    %128 = arith.divf %124, %127 : vector<16x16xf32>
    %cst_62 = arith.constant dense<0.000000e+00> : vector<16x8xf32>
    %129 = tpu.matmul %128, %117, %cst_62 {dimension_numbers = #tpu.dot_dimension_numbers<[1], [0], [0], [1], [0, 0, 1, 1], [], []>} : vector<16x16xf32>, vector<16x8xf32>, vector<16x8xf32> -> vector<16x8xf32>
    %130 = vector.extract_strided_slice %99 {offsets = [0, 16], sizes = [16, 8], strides = [1, 1]} : vector<16x96xf32> to vector<16x8xf32>
    %131 = vector.extract_strided_slice %99 {offsets = [0, 48], sizes = [16, 8], strides = [1, 1]} : vector<16x96xf32> to vector<16x8xf32>
    %132 = vector.extract_strided_slice %99 {offsets = [0, 80], sizes = [16, 8], strides = [1, 1]} : vector<16x96xf32> to vector<16x8xf32>
    %cst_63 = arith.constant dense<0.000000e+00> : vector<16x16xf32>
    %133 = tpu.matmul %130, %131, %cst_63 {dimension_numbers = #tpu.dot_dimension_numbers<[1], [1], [0], [0], [0, 0, 1, 0], [], []>} : vector<16x8xf32>, vector<16x8xf32>, vector<16x16xf32> -> vector<16x16xf32>
    %134 = arith.addf %133, %64 : vector<16x16xf32>
    %cst_64 = arith.constant dense<0xFF800000> : vector<16xf32>
    %135 = vector.multi_reduction <maximumf>, %134, %cst_64 [1] : vector<16x16xf32> to vector<16xf32>
    %136 = vector.shape_cast %135 : vector<16xf32> to vector<16x1xf32>
    %137 = vector.broadcast %136 : vector<16x1xf32> to vector<16x16xf32>
    %138 = arith.subf %134, %137 : vector<16x16xf32>
    %139 = math.exp %138 : vector<16x16xf32>
    %cst_65 = arith.constant dense<0.000000e+00> : vector<16xf32>
    %140 = vector.multi_reduction <add>, %139, %cst_65 [1] : vector<16x16xf32> to vector<16xf32>
    %141 = vector.shape_cast %140 : vector<16xf32> to vector<16x1xf32>
    %142 = vector.broadcast %141 : vector<16x1xf32> to vector<16x16xf32>
    %143 = arith.divf %139, %142 : vector<16x16xf32>
    %cst_66 = arith.constant dense<0.000000e+00> : vector<16x8xf32>
    %144 = tpu.matmul %143, %132, %cst_66 {dimension_numbers = #tpu.dot_dimension_numbers<[1], [0], [0], [1], [0, 0, 1, 1], [], []>} : vector<16x16xf32>, vector<16x8xf32>, vector<16x8xf32> -> vector<16x8xf32>
    %145 = vector.extract_strided_slice %99 {offsets = [0, 24], sizes = [16, 8], strides = [1, 1]} : vector<16x96xf32> to vector<16x8xf32>
    %146 = vector.extract_strided_slice %99 {offsets = [0, 56], sizes = [16, 8], strides = [1, 1]} : vector<16x96xf32> to vector<16x8xf32>
    %147 = vector.extract_strided_slice %99 {offsets = [0, 88], sizes = [16, 8], strides = [1, 1]} : vector<16x96xf32> to vector<16x8xf32>
    %cst_67 = arith.constant dense<0.000000e+00> : vector<16x16xf32>
    %148 = tpu.matmul %145, %146, %cst_67 {dimension_numbers = #tpu.dot_dimension_numbers<[1], [1], [0], [0], [0, 0, 1, 0], [], []>} : vector<16x8xf32>, vector<16x8xf32>, vector<16x16xf32> -> vector<16x16xf32>
    %149 = arith.addf %148, %64 : vector<16x16xf32>
    %cst_68 = arith.constant dense<0xFF800000> : vector<16xf32>
    %150 = vector.multi_reduction <maximumf>, %149, %cst_68 [1] : vector<16x16xf32> to vector<16xf32>
    %151 = vector.shape_cast %150 : vector<16xf32> to vector<16x1xf32>
    %152 = vector.broadcast %151 : vector<16x1xf32> to vector<16x16xf32>
    %153 = arith.subf %149, %152 : vector<16x16xf32>
    %154 = math.exp %153 : vector<16x16xf32>
    %cst_69 = arith.constant dense<0.000000e+00> : vector<16xf32>
    %155 = vector.multi_reduction <add>, %154, %cst_69 [1] : vector<16x16xf32> to vector<16xf32>
    %156 = vector.shape_cast %155 : vector<16xf32> to vector<16x1xf32>
    %157 = vector.broadcast %156 : vector<16x1xf32> to vector<16x16xf32>
    %158 = arith.divf %154, %157 : vector<16x16xf32>
    %cst_70 = arith.constant dense<0.000000e+00> : vector<16x8xf32>
    %159 = tpu.matmul %158, %147, %cst_70 {dimension_numbers = #tpu.dot_dimension_numbers<[1], [0], [0], [1], [0, 0, 1, 1], [], []>} : vector<16x16xf32>, vector<16x8xf32>, vector<16x8xf32> -> vector<16x8xf32>
    %160 = tpu.concatenate %114, %129, %144, %159 in 1 : vector<16x8xf32>, vector<16x8xf32>, vector<16x8xf32>, vector<16x8xf32> -> vector<16x32xf32>
    %c0_71 = arith.constant 0 : index
    %c0_72 = arith.constant 0 : index
    %c0_73 = arith.constant 0 : index
    %161 = vector.load %arg16[%c0_71, %c0_72, %c0_73] : memref<2x32x32xf32, #tpu.memory_space<vmem>>, vector<1x32x32xf32>
    %162 = vector.shape_cast %161 : vector<1x32x32xf32> to vector<32x32xf32>
    %cst_74 = arith.constant dense<0.000000e+00> : vector<16x32xf32>
    %163 = tpu.matmul %160, %162, %cst_74 {dimension_numbers = #tpu.dot_dimension_numbers<[1], [0], [0], [1], [0, 0, 1, 1], [], []>} : vector<16x32xf32>, vector<32x32xf32>, vector<16x32xf32> -> vector<16x32xf32>
    %164 = arith.addf %63, %163 : vector<16x32xf32>
    %c0_75 = arith.constant 0 : index
    %c0_76 = arith.constant 0 : index
    %c0_77 = arith.constant 0 : index
    %165 = vector.load %arg17[%c0_75, %c0_76, %c0_77] : memref<2x1x32xf32, #tpu.memory_space<vmem>>, vector<1x1x32xf32>
    %166 = vector.shape_cast %165 : vector<1x1x32xf32> to vector<1x32xf32>
    %167 = vector.broadcast %166 : vector<1x32xf32> to vector<16x32xf32>
    %168 = arith.addf %164, %167 : vector<16x32xf32>
    %c0_78 = arith.constant 0 : index
    %c0_79 = arith.constant 0 : index
    %c0_80 = arith.constant 0 : index
    %169 = vector.load %arg18[%c0_78, %c0_79, %c0_80] : memref<2x1x32xf32, #tpu.memory_space<vmem>>, vector<1x1x32xf32>
    %170 = vector.shape_cast %169 : vector<1x1x32xf32> to vector<1x32xf32>
    %c0_81 = arith.constant 0 : index
    %c0_82 = arith.constant 0 : index
    %c0_83 = arith.constant 0 : index
    %171 = vector.load %arg19[%c0_81, %c0_82, %c0_83] : memref<2x1x32xf32, #tpu.memory_space<vmem>>, vector<1x1x32xf32>
    %172 = vector.shape_cast %171 : vector<1x1x32xf32> to vector<1x32xf32>
    %cst_84 = arith.constant dense<0.000000e+00> : vector<16xf32>
    %173 = vector.multi_reduction <add>, %168, %cst_84 [1] : vector<16x32xf32> to vector<16xf32>
    %174 = vector.shape_cast %173 : vector<16xf32> to vector<16x1xf32>
    %cst_85 = arith.constant 3.200000e+01 : f32
    %175 = vector.broadcast %cst_85 : f32 to vector<16x1xf32>
    %176 = arith.divf %174, %175 : vector<16x1xf32>
    %177 = arith.mulf %168, %168 : vector<16x32xf32>
    %cst_86 = arith.constant dense<0.000000e+00> : vector<16xf32>
    %178 = vector.multi_reduction <add>, %177, %cst_86 [1] : vector<16x32xf32> to vector<16xf32>
    %179 = vector.shape_cast %178 : vector<16xf32> to vector<16x1xf32>
    %cst_87 = arith.constant 3.200000e+01 : f32
    %180 = vector.broadcast %cst_87 : f32 to vector<16x1xf32>
    %181 = arith.divf %179, %180 : vector<16x1xf32>
    %182 = arith.mulf %176, %176 : vector<16x1xf32>
    %183 = arith.subf %181, %182 : vector<16x1xf32>
    %184 = vector.broadcast %176 : vector<16x1xf32> to vector<16x32xf32>
    %185 = arith.subf %168, %184 : vector<16x32xf32>
    %cst_88 = arith.constant 9.99999974E-6 : f32
    %186 = vector.broadcast %cst_88 : f32 to vector<16x1xf32>
    %187 = arith.addf %183, %186 : vector<16x1xf32>
    %188 = math.rsqrt %187 : vector<16x1xf32>
    %189 = vector.broadcast %188 : vector<16x1xf32> to vector<16x32xf32>
    %190 = arith.mulf %185, %189 : vector<16x32xf32>
    %191 = vector.broadcast %170 : vector<1x32xf32> to vector<16x32xf32>
    %192 = arith.mulf %190, %191 : vector<16x32xf32>
    %193 = vector.broadcast %172 : vector<1x32xf32> to vector<16x32xf32>
    %194 = arith.addf %192, %193 : vector<16x32xf32>
    %c0_89 = arith.constant 0 : index
    %c0_90 = arith.constant 0 : index
    %c0_91 = arith.constant 0 : index
    %195 = vector.load %arg20[%c0_89, %c0_90, %c0_91] : memref<2x32x128xf32, #tpu.memory_space<vmem>>, vector<1x32x128xf32>
    %196 = vector.shape_cast %195 : vector<1x32x128xf32> to vector<32x128xf32>
    %cst_92 = arith.constant dense<0.000000e+00> : vector<16x128xf32>
    %197 = tpu.matmul %194, %196, %cst_92 {dimension_numbers = #tpu.dot_dimension_numbers<[1], [0], [0], [1], [0, 0, 1, 1], [], []>} : vector<16x32xf32>, vector<32x128xf32>, vector<16x128xf32> -> vector<16x128xf32>
    %c0_93 = arith.constant 0 : index
    %c0_94 = arith.constant 0 : index
    %c0_95 = arith.constant 0 : index
    %198 = vector.load %arg21[%c0_93, %c0_94, %c0_95] : memref<2x1x128xf32, #tpu.memory_space<vmem>>, vector<1x1x128xf32>
    %199 = vector.shape_cast %198 : vector<1x1x128xf32> to vector<1x128xf32>
    %200 = vector.broadcast %199 : vector<1x128xf32> to vector<16x128xf32>
    %201 = arith.addf %197, %200 : vector<16x128xf32>
    %cst_96 = arith.constant 1.702000e+00 : f32
    %202 = vector.broadcast %cst_96 : f32 to vector<16x128xf32>
    %203 = arith.mulf %202, %201 : vector<16x128xf32>
    %204 = arith.negf %203 : vector<16x128xf32>
    %205 = math.exp %204 : vector<16x128xf32>
    %cst_97 = arith.constant 1.000000e+00 : f32
    %206 = vector.broadcast %cst_97 : f32 to vector<16x128xf32>
    %207 = arith.addf %206, %205 : vector<16x128xf32>
    %208 = arith.divf %206, %207 : vector<16x128xf32>
    %209 = arith.mulf %201, %208 : vector<16x128xf32>
    %c0_98 = arith.constant 0 : index
    %c0_99 = arith.constant 0 : index
    %c0_100 = arith.constant 0 : index
    %210 = vector.load %arg22[%c0_98, %c0_99, %c0_100] : memref<2x128x32xf32, #tpu.memory_space<vmem>>, vector<1x128x32xf32>
    %211 = vector.shape_cast %210 : vector<1x128x32xf32> to vector<128x32xf32>
    %cst_101 = arith.constant dense<0.000000e+00> : vector<16x32xf32>
    %212 = tpu.matmul %209, %211, %cst_101 {dimension_numbers = #tpu.dot_dimension_numbers<[1], [0], [0], [1], [0, 0, 1, 1], [], []>} : vector<16x128xf32>, vector<128x32xf32>, vector<16x32xf32> -> vector<16x32xf32>
    %213 = arith.addf %168, %212 : vector<16x32xf32>
    %c0_102 = arith.constant 0 : index
    %c0_103 = arith.constant 0 : index
    %c0_104 = arith.constant 0 : index
    %214 = vector.load %arg23[%c0_102, %c0_103, %c0_104] : memref<2x1x32xf32, #tpu.memory_space<vmem>>, vector<1x1x32xf32>
    %215 = vector.shape_cast %214 : vector<1x1x32xf32> to vector<1x32xf32>
    %216 = vector.broadcast %215 : vector<1x32xf32> to vector<16x32xf32>
    %217 = arith.addf %213, %216 : vector<16x32xf32>
    %c1_105 = arith.constant 1 : index
    %c0_106 = arith.constant 0 : index
    %c0_107 = arith.constant 0 : index
    %218 = vector.load %arg9[%c1_105, %c0_106, %c0_107] : memref<2x2x16xf32, #tpu.memory_space<vmem>>, vector<1x2x16xf32>
    %219 = vector.shape_cast %218 : vector<1x2x16xf32> to vector<2x16xf32>
    %cst_108 = arith.constant dense<0.000000e+00> : vector<2x32xf32>
    %220 = tpu.matmul %219, %2, %cst_108 {dimension_numbers = #tpu.dot_dimension_numbers<[1], [0], [0], [1], [0, 0, 1, 1], [], []>} : vector<2x16xf32>, vector<16x32xf32>, vector<2x32xf32> -> vector<2x32xf32>
    %221 = vector.broadcast %3 : vector<1x32xf32> to vector<2x32xf32>
    %222 = arith.addf %220, %221 : vector<2x32xf32>
    %cst_109 = arith.constant dense<0.000000e+00> : vector<16x32xf32>
    %223 = tpu.matmul %65, %222, %cst_109 {dimension_numbers = #tpu.dot_dimension_numbers<[1], [0], [0], [1], [0, 0, 1, 1], [], []>} : vector<16x2xf32>, vector<2x32xf32>, vector<16x32xf32> -> vector<16x32xf32>
    %224 = vector.broadcast %66 : vector<16x1xf32> to vector<16x32xf32>
    %225 = arith.mulf %224, %223 : vector<16x32xf32>
    %cst_110 = arith.constant 1.000000e+00 : f32
    %226 = vector.broadcast %cst_110 : f32 to vector<16x1xf32>
    %227 = arith.subf %226, %66 : vector<16x1xf32>
    %228 = vector.broadcast %227 : vector<16x1xf32> to vector<16x32xf32>
    %229 = arith.mulf %228, %217 : vector<16x32xf32>
    %230 = arith.addf %225, %229 : vector<16x32xf32>
    %c1_111 = arith.constant 1 : index
    %c0_112 = arith.constant 0 : index
    %c0_113 = arith.constant 0 : index
    %231 = vector.load %arg12[%c1_111, %c0_112, %c0_113] : memref<2x1x32xf32, #tpu.memory_space<vmem>>, vector<1x1x32xf32>
    %232 = vector.shape_cast %231 : vector<1x1x32xf32> to vector<1x32xf32>
    %c1_114 = arith.constant 1 : index
    %c0_115 = arith.constant 0 : index
    %c0_116 = arith.constant 0 : index
    %233 = vector.load %arg13[%c1_114, %c0_115, %c0_116] : memref<2x1x32xf32, #tpu.memory_space<vmem>>, vector<1x1x32xf32>
    %234 = vector.shape_cast %233 : vector<1x1x32xf32> to vector<1x32xf32>
    %cst_117 = arith.constant dense<0.000000e+00> : vector<16xf32>
    %235 = vector.multi_reduction <add>, %230, %cst_117 [1] : vector<16x32xf32> to vector<16xf32>
    %236 = vector.shape_cast %235 : vector<16xf32> to vector<16x1xf32>
    %cst_118 = arith.constant 3.200000e+01 : f32
    %237 = vector.broadcast %cst_118 : f32 to vector<16x1xf32>
    %238 = arith.divf %236, %237 : vector<16x1xf32>
    %239 = arith.mulf %230, %230 : vector<16x32xf32>
    %cst_119 = arith.constant dense<0.000000e+00> : vector<16xf32>
    %240 = vector.multi_reduction <add>, %239, %cst_119 [1] : vector<16x32xf32> to vector<16xf32>
    %241 = vector.shape_cast %240 : vector<16xf32> to vector<16x1xf32>
    %cst_120 = arith.constant 3.200000e+01 : f32
    %242 = vector.broadcast %cst_120 : f32 to vector<16x1xf32>
    %243 = arith.divf %241, %242 : vector<16x1xf32>
    %244 = arith.mulf %238, %238 : vector<16x1xf32>
    %245 = arith.subf %243, %244 : vector<16x1xf32>
    %246 = vector.broadcast %238 : vector<16x1xf32> to vector<16x32xf32>
    %247 = arith.subf %230, %246 : vector<16x32xf32>
    %cst_121 = arith.constant 9.99999974E-6 : f32
    %248 = vector.broadcast %cst_121 : f32 to vector<16x1xf32>
    %249 = arith.addf %245, %248 : vector<16x1xf32>
    %250 = math.rsqrt %249 : vector<16x1xf32>
    %251 = vector.broadcast %250 : vector<16x1xf32> to vector<16x32xf32>
    %252 = arith.mulf %247, %251 : vector<16x32xf32>
    %253 = vector.broadcast %232 : vector<1x32xf32> to vector<16x32xf32>
    %254 = arith.mulf %252, %253 : vector<16x32xf32>
    %255 = vector.broadcast %234 : vector<1x32xf32> to vector<16x32xf32>
    %256 = arith.addf %254, %255 : vector<16x32xf32>
    %c1_122 = arith.constant 1 : index
    %c0_123 = arith.constant 0 : index
    %c0_124 = arith.constant 0 : index
    %257 = vector.load %arg14[%c1_122, %c0_123, %c0_124] : memref<2x32x96xf32, #tpu.memory_space<vmem>>, vector<1x32x96xf32>
    %258 = vector.shape_cast %257 : vector<1x32x96xf32> to vector<32x96xf32>
    %cst_125 = arith.constant dense<0.000000e+00> : vector<16x96xf32>
    %259 = tpu.matmul %256, %258, %cst_125 {dimension_numbers = #tpu.dot_dimension_numbers<[1], [0], [0], [1], [0, 0, 1, 1], [], []>} : vector<16x32xf32>, vector<32x96xf32>, vector<16x96xf32> -> vector<16x96xf32>
    %c1_126 = arith.constant 1 : index
    %c0_127 = arith.constant 0 : index
    %c0_128 = arith.constant 0 : index
    %260 = vector.load %arg15[%c1_126, %c0_127, %c0_128] : memref<2x1x96xf32, #tpu.memory_space<vmem>>, vector<1x1x96xf32>
    %261 = vector.shape_cast %260 : vector<1x1x96xf32> to vector<1x96xf32>
    %262 = vector.broadcast %261 : vector<1x96xf32> to vector<16x96xf32>
    %263 = arith.addf %259, %262 : vector<16x96xf32>
    %264 = vector.extract_strided_slice %263 {offsets = [0, 0], sizes = [16, 8], strides = [1, 1]} : vector<16x96xf32> to vector<16x8xf32>
    %265 = vector.extract_strided_slice %263 {offsets = [0, 32], sizes = [16, 8], strides = [1, 1]} : vector<16x96xf32> to vector<16x8xf32>
    %266 = vector.extract_strided_slice %263 {offsets = [0, 64], sizes = [16, 8], strides = [1, 1]} : vector<16x96xf32> to vector<16x8xf32>
    %cst_129 = arith.constant dense<0.000000e+00> : vector<16x16xf32>
    %267 = tpu.matmul %264, %265, %cst_129 {dimension_numbers = #tpu.dot_dimension_numbers<[1], [1], [0], [0], [0, 0, 1, 0], [], []>} : vector<16x8xf32>, vector<16x8xf32>, vector<16x16xf32> -> vector<16x16xf32>
    %268 = arith.addf %267, %64 : vector<16x16xf32>
    %cst_130 = arith.constant dense<0xFF800000> : vector<16xf32>
    %269 = vector.multi_reduction <maximumf>, %268, %cst_130 [1] : vector<16x16xf32> to vector<16xf32>
    %270 = vector.shape_cast %269 : vector<16xf32> to vector<16x1xf32>
    %271 = vector.broadcast %270 : vector<16x1xf32> to vector<16x16xf32>
    %272 = arith.subf %268, %271 : vector<16x16xf32>
    %273 = math.exp %272 : vector<16x16xf32>
    %cst_131 = arith.constant dense<0.000000e+00> : vector<16xf32>
    %274 = vector.multi_reduction <add>, %273, %cst_131 [1] : vector<16x16xf32> to vector<16xf32>
    %275 = vector.shape_cast %274 : vector<16xf32> to vector<16x1xf32>
    %276 = vector.broadcast %275 : vector<16x1xf32> to vector<16x16xf32>
    %277 = arith.divf %273, %276 : vector<16x16xf32>
    %cst_132 = arith.constant dense<0.000000e+00> : vector<16x8xf32>
    %278 = tpu.matmul %277, %266, %cst_132 {dimension_numbers = #tpu.dot_dimension_numbers<[1], [0], [0], [1], [0, 0, 1, 1], [], []>} : vector<16x16xf32>, vector<16x8xf32>, vector<16x8xf32> -> vector<16x8xf32>
    %279 = vector.extract_strided_slice %263 {offsets = [0, 8], sizes = [16, 8], strides = [1, 1]} : vector<16x96xf32> to vector<16x8xf32>
    %280 = vector.extract_strided_slice %263 {offsets = [0, 40], sizes = [16, 8], strides = [1, 1]} : vector<16x96xf32> to vector<16x8xf32>
    %281 = vector.extract_strided_slice %263 {offsets = [0, 72], sizes = [16, 8], strides = [1, 1]} : vector<16x96xf32> to vector<16x8xf32>
    %cst_133 = arith.constant dense<0.000000e+00> : vector<16x16xf32>
    %282 = tpu.matmul %279, %280, %cst_133 {dimension_numbers = #tpu.dot_dimension_numbers<[1], [1], [0], [0], [0, 0, 1, 0], [], []>} : vector<16x8xf32>, vector<16x8xf32>, vector<16x16xf32> -> vector<16x16xf32>
    %283 = arith.addf %282, %64 : vector<16x16xf32>
    %cst_134 = arith.constant dense<0xFF800000> : vector<16xf32>
    %284 = vector.multi_reduction <maximumf>, %283, %cst_134 [1] : vector<16x16xf32> to vector<16xf32>
    %285 = vector.shape_cast %284 : vector<16xf32> to vector<16x1xf32>
    %286 = vector.broadcast %285 : vector<16x1xf32> to vector<16x16xf32>
    %287 = arith.subf %283, %286 : vector<16x16xf32>
    %288 = math.exp %287 : vector<16x16xf32>
    %cst_135 = arith.constant dense<0.000000e+00> : vector<16xf32>
    %289 = vector.multi_reduction <add>, %288, %cst_135 [1] : vector<16x16xf32> to vector<16xf32>
    %290 = vector.shape_cast %289 : vector<16xf32> to vector<16x1xf32>
    %291 = vector.broadcast %290 : vector<16x1xf32> to vector<16x16xf32>
    %292 = arith.divf %288, %291 : vector<16x16xf32>
    %cst_136 = arith.constant dense<0.000000e+00> : vector<16x8xf32>
    %293 = tpu.matmul %292, %281, %cst_136 {dimension_numbers = #tpu.dot_dimension_numbers<[1], [0], [0], [1], [0, 0, 1, 1], [], []>} : vector<16x16xf32>, vector<16x8xf32>, vector<16x8xf32> -> vector<16x8xf32>
    %294 = vector.extract_strided_slice %263 {offsets = [0, 16], sizes = [16, 8], strides = [1, 1]} : vector<16x96xf32> to vector<16x8xf32>
    %295 = vector.extract_strided_slice %263 {offsets = [0, 48], sizes = [16, 8], strides = [1, 1]} : vector<16x96xf32> to vector<16x8xf32>
    %296 = vector.extract_strided_slice %263 {offsets = [0, 80], sizes = [16, 8], strides = [1, 1]} : vector<16x96xf32> to vector<16x8xf32>
    %cst_137 = arith.constant dense<0.000000e+00> : vector<16x16xf32>
    %297 = tpu.matmul %294, %295, %cst_137 {dimension_numbers = #tpu.dot_dimension_numbers<[1], [1], [0], [0], [0, 0, 1, 0], [], []>} : vector<16x8xf32>, vector<16x8xf32>, vector<16x16xf32> -> vector<16x16xf32>
    %298 = arith.addf %297, %64 : vector<16x16xf32>
    %cst_138 = arith.constant dense<0xFF800000> : vector<16xf32>
    %299 = vector.multi_reduction <maximumf>, %298, %cst_138 [1] : vector<16x16xf32> to vector<16xf32>
    %300 = vector.shape_cast %299 : vector<16xf32> to vector<16x1xf32>
    %301 = vector.broadcast %300 : vector<16x1xf32> to vector<16x16xf32>
    %302 = arith.subf %298, %301 : vector<16x16xf32>
    %303 = math.exp %302 : vector<16x16xf32>
    %cst_139 = arith.constant dense<0.000000e+00> : vector<16xf32>
    %304 = vector.multi_reduction <add>, %303, %cst_139 [1] : vector<16x16xf32> to vector<16xf32>
    %305 = vector.shape_cast %304 : vector<16xf32> to vector<16x1xf32>
    %306 = vector.broadcast %305 : vector<16x1xf32> to vector<16x16xf32>
    %307 = arith.divf %303, %306 : vector<16x16xf32>
    %cst_140 = arith.constant dense<0.000000e+00> : vector<16x8xf32>
    %308 = tpu.matmul %307, %296, %cst_140 {dimension_numbers = #tpu.dot_dimension_numbers<[1], [0], [0], [1], [0, 0, 1, 1], [], []>} : vector<16x16xf32>, vector<16x8xf32>, vector<16x8xf32> -> vector<16x8xf32>
    %309 = vector.extract_strided_slice %263 {offsets = [0, 24], sizes = [16, 8], strides = [1, 1]} : vector<16x96xf32> to vector<16x8xf32>
    %310 = vector.extract_strided_slice %263 {offsets = [0, 56], sizes = [16, 8], strides = [1, 1]} : vector<16x96xf32> to vector<16x8xf32>
    %311 = vector.extract_strided_slice %263 {offsets = [0, 88], sizes = [16, 8], strides = [1, 1]} : vector<16x96xf32> to vector<16x8xf32>
    %cst_141 = arith.constant dense<0.000000e+00> : vector<16x16xf32>
    %312 = tpu.matmul %309, %310, %cst_141 {dimension_numbers = #tpu.dot_dimension_numbers<[1], [1], [0], [0], [0, 0, 1, 0], [], []>} : vector<16x8xf32>, vector<16x8xf32>, vector<16x16xf32> -> vector<16x16xf32>
    %313 = arith.addf %312, %64 : vector<16x16xf32>
    %cst_142 = arith.constant dense<0xFF800000> : vector<16xf32>
    %314 = vector.multi_reduction <maximumf>, %313, %cst_142 [1] : vector<16x16xf32> to vector<16xf32>
    %315 = vector.shape_cast %314 : vector<16xf32> to vector<16x1xf32>
    %316 = vector.broadcast %315 : vector<16x1xf32> to vector<16x16xf32>
    %317 = arith.subf %313, %316 : vector<16x16xf32>
    %318 = math.exp %317 : vector<16x16xf32>
    %cst_143 = arith.constant dense<0.000000e+00> : vector<16xf32>
    %319 = vector.multi_reduction <add>, %318, %cst_143 [1] : vector<16x16xf32> to vector<16xf32>
    %320 = vector.shape_cast %319 : vector<16xf32> to vector<16x1xf32>
    %321 = vector.broadcast %320 : vector<16x1xf32> to vector<16x16xf32>
    %322 = arith.divf %318, %321 : vector<16x16xf32>
    %cst_144 = arith.constant dense<0.000000e+00> : vector<16x8xf32>
    %323 = tpu.matmul %322, %311, %cst_144 {dimension_numbers = #tpu.dot_dimension_numbers<[1], [0], [0], [1], [0, 0, 1, 1], [], []>} : vector<16x16xf32>, vector<16x8xf32>, vector<16x8xf32> -> vector<16x8xf32>
    %324 = tpu.concatenate %278, %293, %308, %323 in 1 : vector<16x8xf32>, vector<16x8xf32>, vector<16x8xf32>, vector<16x8xf32> -> vector<16x32xf32>
    %c1_145 = arith.constant 1 : index
    %c0_146 = arith.constant 0 : index
    %c0_147 = arith.constant 0 : index
    %325 = vector.load %arg16[%c1_145, %c0_146, %c0_147] : memref<2x32x32xf32, #tpu.memory_space<vmem>>, vector<1x32x32xf32>
    %326 = vector.shape_cast %325 : vector<1x32x32xf32> to vector<32x32xf32>
    %cst_148 = arith.constant dense<0.000000e+00> : vector<16x32xf32>
    %327 = tpu.matmul %324, %326, %cst_148 {dimension_numbers = #tpu.dot_dimension_numbers<[1], [0], [0], [1], [0, 0, 1, 1], [], []>} : vector<16x32xf32>, vector<32x32xf32>, vector<16x32xf32> -> vector<16x32xf32>
    %328 = arith.addf %230, %327 : vector<16x32xf32>
    %c1_149 = arith.constant 1 : index
    %c0_150 = arith.constant 0 : index
    %c0_151 = arith.constant 0 : index
    %329 = vector.load %arg17[%c1_149, %c0_150, %c0_151] : memref<2x1x32xf32, #tpu.memory_space<vmem>>, vector<1x1x32xf32>
    %330 = vector.shape_cast %329 : vector<1x1x32xf32> to vector<1x32xf32>
    %331 = vector.broadcast %330 : vector<1x32xf32> to vector<16x32xf32>
    %332 = arith.addf %328, %331 : vector<16x32xf32>
    %c1_152 = arith.constant 1 : index
    %c0_153 = arith.constant 0 : index
    %c0_154 = arith.constant 0 : index
    %333 = vector.load %arg18[%c1_152, %c0_153, %c0_154] : memref<2x1x32xf32, #tpu.memory_space<vmem>>, vector<1x1x32xf32>
    %334 = vector.shape_cast %333 : vector<1x1x32xf32> to vector<1x32xf32>
    %c1_155 = arith.constant 1 : index
    %c0_156 = arith.constant 0 : index
    %c0_157 = arith.constant 0 : index
    %335 = vector.load %arg19[%c1_155, %c0_156, %c0_157] : memref<2x1x32xf32, #tpu.memory_space<vmem>>, vector<1x1x32xf32>
    %336 = vector.shape_cast %335 : vector<1x1x32xf32> to vector<1x32xf32>
    %cst_158 = arith.constant dense<0.000000e+00> : vector<16xf32>
    %337 = vector.multi_reduction <add>, %332, %cst_158 [1] : vector<16x32xf32> to vector<16xf32>
    %338 = vector.shape_cast %337 : vector<16xf32> to vector<16x1xf32>
    %cst_159 = arith.constant 3.200000e+01 : f32
    %339 = vector.broadcast %cst_159 : f32 to vector<16x1xf32>
    %340 = arith.divf %338, %339 : vector<16x1xf32>
    %341 = arith.mulf %332, %332 : vector<16x32xf32>
    %cst_160 = arith.constant dense<0.000000e+00> : vector<16xf32>
    %342 = vector.multi_reduction <add>, %341, %cst_160 [1] : vector<16x32xf32> to vector<16xf32>
    %343 = vector.shape_cast %342 : vector<16xf32> to vector<16x1xf32>
    %cst_161 = arith.constant 3.200000e+01 : f32
    %344 = vector.broadcast %cst_161 : f32 to vector<16x1xf32>
    %345 = arith.divf %343, %344 : vector<16x1xf32>
    %346 = arith.mulf %340, %340 : vector<16x1xf32>
    %347 = arith.subf %345, %346 : vector<16x1xf32>
    %348 = vector.broadcast %340 : vector<16x1xf32> to vector<16x32xf32>
    %349 = arith.subf %332, %348 : vector<16x32xf32>
    %cst_162 = arith.constant 9.99999974E-6 : f32
    %350 = vector.broadcast %cst_162 : f32 to vector<16x1xf32>
    %351 = arith.addf %347, %350 : vector<16x1xf32>
    %352 = math.rsqrt %351 : vector<16x1xf32>
    %353 = vector.broadcast %352 : vector<16x1xf32> to vector<16x32xf32>
    %354 = arith.mulf %349, %353 : vector<16x32xf32>
    %355 = vector.broadcast %334 : vector<1x32xf32> to vector<16x32xf32>
    %356 = arith.mulf %354, %355 : vector<16x32xf32>
    %357 = vector.broadcast %336 : vector<1x32xf32> to vector<16x32xf32>
    %358 = arith.addf %356, %357 : vector<16x32xf32>
    %c1_163 = arith.constant 1 : index
    %c0_164 = arith.constant 0 : index
    %c0_165 = arith.constant 0 : index
    %359 = vector.load %arg20[%c1_163, %c0_164, %c0_165] : memref<2x32x128xf32, #tpu.memory_space<vmem>>, vector<1x32x128xf32>
    %360 = vector.shape_cast %359 : vector<1x32x128xf32> to vector<32x128xf32>
    %cst_166 = arith.constant dense<0.000000e+00> : vector<16x128xf32>
    %361 = tpu.matmul %358, %360, %cst_166 {dimension_numbers = #tpu.dot_dimension_numbers<[1], [0], [0], [1], [0, 0, 1, 1], [], []>} : vector<16x32xf32>, vector<32x128xf32>, vector<16x128xf32> -> vector<16x128xf32>
    %c1_167 = arith.constant 1 : index
    %c0_168 = arith.constant 0 : index
    %c0_169 = arith.constant 0 : index
    %362 = vector.load %arg21[%c1_167, %c0_168, %c0_169] : memref<2x1x128xf32, #tpu.memory_space<vmem>>, vector<1x1x128xf32>
    %363 = vector.shape_cast %362 : vector<1x1x128xf32> to vector<1x128xf32>
    %364 = vector.broadcast %363 : vector<1x128xf32> to vector<16x128xf32>
    %365 = arith.addf %361, %364 : vector<16x128xf32>
    %cst_170 = arith.constant 1.702000e+00 : f32
    %366 = vector.broadcast %cst_170 : f32 to vector<16x128xf32>
    %367 = arith.mulf %366, %365 : vector<16x128xf32>
    %368 = arith.negf %367 : vector<16x128xf32>
    %369 = math.exp %368 : vector<16x128xf32>
    %cst_171 = arith.constant 1.000000e+00 : f32
    %370 = vector.broadcast %cst_171 : f32 to vector<16x128xf32>
    %371 = arith.addf %370, %369 : vector<16x128xf32>
    %372 = arith.divf %370, %371 : vector<16x128xf32>
    %373 = arith.mulf %365, %372 : vector<16x128xf32>
    %c1_172 = arith.constant 1 : index
    %c0_173 = arith.constant 0 : index
    %c0_174 = arith.constant 0 : index
    %374 = vector.load %arg22[%c1_172, %c0_173, %c0_174] : memref<2x128x32xf32, #tpu.memory_space<vmem>>, vector<1x128x32xf32>
    %375 = vector.shape_cast %374 : vector<1x128x32xf32> to vector<128x32xf32>
    %cst_175 = arith.constant dense<0.000000e+00> : vector<16x32xf32>
    %376 = tpu.matmul %373, %375, %cst_175 {dimension_numbers = #tpu.dot_dimension_numbers<[1], [0], [0], [1], [0, 0, 1, 1], [], []>} : vector<16x128xf32>, vector<128x32xf32>, vector<16x32xf32> -> vector<16x32xf32>
    %377 = arith.addf %332, %376 : vector<16x32xf32>
    %c1_176 = arith.constant 1 : index
    %c0_177 = arith.constant 0 : index
    %c0_178 = arith.constant 0 : index
    %378 = vector.load %arg23[%c1_176, %c0_177, %c0_178] : memref<2x1x32xf32, #tpu.memory_space<vmem>>, vector<1x1x32xf32>
    %379 = vector.shape_cast %378 : vector<1x1x32xf32> to vector<1x32xf32>
    %380 = vector.broadcast %379 : vector<1x32xf32> to vector<16x32xf32>
    %381 = arith.addf %377, %380 : vector<16x32xf32>
    %382 = vector.extract_strided_slice %381 {offsets = [0, 0], sizes = [1, 32], strides = [1, 1]} : vector<16x32xf32> to vector<1x32xf32>
    %383 = vector.extract_strided_slice %381 {offsets = [8, 0], sizes = [1, 32], strides = [1, 1]} : vector<16x32xf32> to vector<1x32xf32>
    %384 = tpu.concatenate %382, %383 in 0 : vector<1x32xf32>, vector<1x32xf32> -> vector<2x32xf32>
    %c0_179 = arith.constant 0 : index
    %c0_180 = arith.constant 0 : index
    %385 = vector.load %arg24[%c0_179, %c0_180] : memref<1x32xf32, #tpu.memory_space<vmem>>, vector<1x32xf32>
    %c0_181 = arith.constant 0 : index
    %c0_182 = arith.constant 0 : index
    %386 = vector.load %arg25[%c0_181, %c0_182] : memref<1x32xf32, #tpu.memory_space<vmem>>, vector<1x32xf32>
    %cst_183 = arith.constant dense<0.000000e+00> : vector<2xf32>
    %387 = vector.multi_reduction <add>, %384, %cst_183 [1] : vector<2x32xf32> to vector<2xf32>
    %388 = vector.shape_cast %387 : vector<2xf32> to vector<2x1xf32>
    %cst_184 = arith.constant 3.200000e+01 : f32
    %389 = vector.broadcast %cst_184 : f32 to vector<2x1xf32>
    %390 = arith.divf %388, %389 : vector<2x1xf32>
    %391 = arith.mulf %384, %384 : vector<2x32xf32>
    %cst_185 = arith.constant dense<0.000000e+00> : vector<2xf32>
    %392 = vector.multi_reduction <add>, %391, %cst_185 [1] : vector<2x32xf32> to vector<2xf32>
    %393 = vector.shape_cast %392 : vector<2xf32> to vector<2x1xf32>
    %cst_186 = arith.constant 3.200000e+01 : f32
    %394 = vector.broadcast %cst_186 : f32 to vector<2x1xf32>
    %395 = arith.divf %393, %394 : vector<2x1xf32>
    %396 = arith.mulf %390, %390 : vector<2x1xf32>
    %397 = arith.subf %395, %396 : vector<2x1xf32>
    %398 = vector.broadcast %390 : vector<2x1xf32> to vector<2x32xf32>
    %399 = arith.subf %384, %398 : vector<2x32xf32>
    %cst_187 = arith.constant 9.99999974E-6 : f32
    %400 = vector.broadcast %cst_187 : f32 to vector<2x1xf32>
    %401 = arith.addf %397, %400 : vector<2x1xf32>
    %402 = math.rsqrt %401 : vector<2x1xf32>
    %403 = vector.broadcast %402 : vector<2x1xf32> to vector<2x32xf32>
    %404 = arith.mulf %399, %403 : vector<2x32xf32>
    %405 = vector.broadcast %385 : vector<1x32xf32> to vector<2x32xf32>
    %406 = arith.mulf %404, %405 : vector<2x32xf32>
    %407 = vector.broadcast %386 : vector<1x32xf32> to vector<2x32xf32>
    %408 = arith.addf %406, %407 : vector<2x32xf32>
    %c0_188 = arith.constant 0 : index
    %c0_189 = arith.constant 0 : index
    %409 = vector.load %arg26[%c0_188, %c0_189] : memref<32x16xf32, #tpu.memory_space<vmem>>, vector<32x16xf32>
    %cst_190 = arith.constant dense<0.000000e+00> : vector<2x16xf32>
    %410 = tpu.matmul %408, %409, %cst_190 {dimension_numbers = #tpu.dot_dimension_numbers<[1], [0], [0], [1], [0, 0, 1, 1], [], []>} : vector<2x32xf32>, vector<32x16xf32>, vector<2x16xf32> -> vector<2x16xf32>
    %c0_191 = arith.constant 0 : index
    %c0_192 = arith.constant 0 : index
    %411 = vector.load %arg27[%c0_191, %c0_192] : memref<2x16xf32, #tpu.memory_space<vmem>>, vector<2x16xf32>
    tpu.vector_store %arg27[%c0_191, %c0_192], %410 {strides = array<i32>} : memref<2x16xf32, #tpu.memory_space<vmem>>, vector<2x16xf32>,
    return
  }
}

</mosaic_0001>

<bundles_post_ra>
// kernel: image_encoder_forward.1
= control target key start
LH: loop header
LB: loop body
LE: loop exit
PB: predicated region body
PF: predicated region fallthrough
CT: control target
= control target key end

     0   :  { %s4962_s0 = inlined_call_operand.vmem [shape: f32[8,192], index: 0, kind: input, shape index: {}]   ;;  %s4963_s1 = inlined_call_operand.vmem [shape: f32[192,32], index: 1, kind: input, shape index: {}]   ;;  %s4964_s2 = inlined_call_operand.vmem [shape: f32[1,32], index: 2, kind: input, shape index: {}]   ;;  %s4965_s3 = inlined_call_operand.vmem [shape: f32[5,32], index: 3, kind: input, shape index: {}]   ;;  %s4966_s4 = inlined_call_operand.vmem [shape: f32[1,32], index: 4, kind: input, shape index: {}]   ;;  %s4967_s5 = inlined_call_operand.vmem [shape: f32[1,32], index: 5, kind: input, shape index: {}]   ;;  %s4968_s6 = inlined_call_operand.vmem [shape: f32[16,16], index: 6, kind: input, shape index: {}]   ;;  %s4969_s7 = inlined_call_operand.vmem [shape: f32[16,2], index: 7, kind: input, shape index: {}]   ;;  %s4970_s8 = inlined_call_operand.vmem [shape: f32[16,1], index: 8, kind: input, shape index: {}]   ;;  %s4971_s9 = inlined_call_operand.vmem [shape: f32[2,2,16], index: 9, kind: input, shape index: {}]   ;;  %s4972_s10 = inlined_call_operand.vmem [shape: f32[16,32], index: 10, kind: input, shape index: {}]   ;;  %s4973_s11 = inlined_call_operand.vmem [shape: f32[1,32], index: 11, kind: input, shape index: {}]   ;;  %s4974_s12 = inlined_call_operand.vmem [shape: f32[2,1,32], index: 12, kind: input, shape index: {}]   ;;  %s4975_s13 = inlined_call_operand.vmem [shape: f32[2,1,32], index: 13, kind: input, shape index: {}]   ;;  %s4976_s14 = inlined_call_operand.vmem [shape: f32[2,32,96], index: 14, kind: input, shape index: {}]   ;;  %s4977_s15 = inlined_call_operand.vmem [shape: f32[2,1,96], index: 15, kind: input, shape index: {}]   ;;  %s4978_s16 = inlined_call_operand.vmem [shape: f32[2,32,32], index: 16, kind: input, shape index: {}]   ;;  %s4979_s17 = inlined_call_operand.vmem [shape: f32[2,1,32], index: 17, kind: input, shape index: {}]   ;;  %s4980_s18 = inlined_call_operand.vmem [shape: f32[2,1,32], index: 18, kind: input, shape index: {}]   ;;  %s4981_s19 = inlined_call_operand.vmem [shape: f32[2,1,32], index: 19, kind: input, shape index: {}]   ;;  %s4982_s20 = inlined_call_operand.vmem [shape: f32[2,32,128], index: 20, kind: input, shape index: {}]   ;;  %s4983_s21 = inlined_call_operand.vmem [shape: f32[2,1,128], index: 21, kind: input, shape index: {}]   ;;  %s4984_s22 = inlined_call_operand.vmem [shape: f32[2,128,32], index: 22, kind: input, shape index: {}]   ;;  %s4985_s23 = inlined_call_operand.vmem [shape: f32[2,1,32], index: 23, kind: input, shape index: {}]   ;;  %s4986_s24 = inlined_call_operand.vmem [shape: f32[1,32], index: 24, kind: input, shape index: {}]   ;;  %s4987_s25 = inlined_call_operand.vmem [shape: f32[1,32], index: 25, kind: input, shape index: {}]   ;;  %s4988_s26 = inlined_call_operand.vmem [shape: f32[32,16], index: 26, kind: input, shape index: {}]   ;;  %s4989_s27 = inlined_call_operand.hbm [shape: f32[2,16], index: 27, kind: output, shape index: {}]  }
   0x1   :  { %5018 = sst [smem:[#allocation5_spill]] %s4962_s0 }
   0x2   :  { %5019 = sst [smem:[#allocation6_spill]] %s4963_s1 }
   0x3   :  { %5020 = sst [smem:[#allocation7_spill]] %s4964_s2 }
   0x4   :  { %5021 = sst [smem:[#allocation8_spill]] %s4965_s3 }
   0x5   :  { %5022 = sst [smem:[#allocation9_spill]] %s4966_s4 }
   0x6   :  { %5023 = sst [smem:[#allocation10_spill]] %s4967_s5 }
   0x7   :  { %5024 = sst [smem:[#allocation11_spill]] %s4968_s6 }
   0x8   :  { %5025 = sst [smem:[#allocation12_spill]] %s4969_s7 }
   0x9   :  { %5026 = sst [smem:[#allocation13_spill]] %s4970_s8 }
   0xa   :  { %5027 = sst [smem:[#allocation14_spill]] %s4971_s9 }
   0xb   :  { %5028 = sst [smem:[#allocation15_spill]] %s4972_s10 }
   0xc   :  { %5029 = sst [smem:[#allocation16_spill]] %s4973_s11 }
   0xd   :  { %s5030_s8 = sld [smem:[#allocation6_spill]]  ;;  %v4032_v1 = vmov 0.0   ;;  %vm4033_vm0 = vmmov 0   ;;  %vm146_vm1 = vcmask 523264   ;;  %vm257_vm2 = vcmask 130048  }
   0xe   :  { %150 = vmatprep.subr.mxu0 %v4032_v1  ;;  %3606 = vmatprep.subr.mxu1 %v4032_v1  ;;  %s5031_s2 = sld [smem:[#allocation5_spill]] }
   0xf   :  { %3610 = vmatprep.mubr.msk.f32.mxu1 %vm4033_vm0, %v4032_v1  ;;  %s5032_s4 = sld [smem:[#allocation15_spill]] }
  0x10   :  { %s5033_s29 = sld [smem:[#allocation14_spill]] }
  0x13   :  { %v109_v0 = vld [vmem:[%s5030_s8 + $0x78] sm:$0xff]  ;;  %v108_v2 = vld [vmem:[%s5030_s8 + $0x70] sm:$0xff]  ;;  %v107_v3 = vld [vmem:[%s5030_s8 + $0x68] sm:$0xff] }
  0x14   :  { %151 = vmatpush1.msra.mxu0 %v109_v0  ;;  %v106_v4 = vld [vmem:[%s5030_s8 + $0x60] sm:$0xff]  ;;  %v105_v5 = vld [vmem:[%s5030_s8 + $0x58] sm:$0xff]  ;;  %v93_v6 = vld [vmem:[%s5031_s2 + $0x8] sm:$0xff] }
  0x15   :  { %152 = vmatprep.subr.mxu0 %v4032_v1  ;;  %v90_v7 = vld [vmem:[%s5032_s4 + $0x8] sm:$0xff]  ;;  %v104_v8 = vld [vmem:[%s5030_s8 + $0x50] sm:$0xff]  ;;  %3329 = vmatprep.mubr.msk.f32.mxu0 %vm146_vm1, %v93_v6  ;;  %v89_v9 = vld [vmem:[%s5032_s4] sm:$0xff] }
  0x16   :  { %153 = vmatpush1.msra.mxu0 %v108_v2  ;;  %3607 = vmatpush3.msra.mxu1 %v90_v7  ;;  %v250_v10 = vld [vmem:[%s5033_s29] sm:$0x3] }
  0x17   :  { %154 = vmatprep.subr.mxu0 %v4032_v1 }
  0x18   :  { %155 = vmatpush1.msra.mxu0 %v107_v3 }
  0x19   :  { %156 = vmatprep.subr.mxu0 %v4032_v1 }
  0x1a   :  { %157 = vmatpush1.msra.mxu0 %v106_v4 }
  0x1b   :  { %158 = vmatprep.subr.mxu0 %v4032_v1 }
  0x1c   :  { %159 = vmatpush1.msra.mxu0 %v105_v5 }
  0x1d   :  { %32 = vsyncpa [#allocation3], 0  ;;  %160 = vmatprep.subr.mxu0 %v4032_v1  ;;  %v103_v11 = vld [vmem:[%s5030_s8 + $0x48] sm:$0xff]  ;;  %3608 = vmatprep.subr.mxu1 %v4032_v1  ;;  %v102_v12 = vld [vmem:[%s5030_s8 + $0x40] sm:$0xff]  ;;  %s5034_s5 = sld [smem:[#allocation8_spill]]  ;;  %vm144_vm3 = vcmask 1043456   ;;  %v237_v60 = vlaneseq }
  0x1e   :  { %161 = vmatpush1.msra.mxu0 %v104_v8  ;;  %3609 = vmatpush3.msra.mxu1 %v89_v9  ;;  %v101_v13 = vld [vmem:[%s5030_s8 + $0x38] sm:$0xff]  ;;  %v100_v14 = vld [vmem:[%s5030_s8 + $0x30] sm:$0xff]  ;;  %v99_v15 = vld [vmem:[%s5030_s8 + $0x28] sm:$0xff]  ;;  %s5035_s10 = sld [smem:[#allocation7_spill]]  ;;  %vm220_vm4 = vcmask 261120   ;;  %vm121_vm5 = vcmask 253952  }
  0x1f   :  { %162 = vmatprep.subr.mxu0 %v4032_v1  ;;  %3611 = vmatmul.mubr.msk.f32.vlgmr.msra.gmra.mxu1 %vm257_vm2, %v250_v10  ;;  %v98_v16 = vld [vmem:[%s5030_s8 + $0x20] sm:$0xff]  ;;  %v97_v17 = vld [vmem:[%s5030_s8 + $0x18] sm:$0xff]  ;;  %v96_v18 = vld [vmem:[%s5030_s8 + $0x10] sm:$0xff]  ;;  %v238_v62 = vshrl.u32 %v237_v60, 7  ;;  %s5036_s11 = sld [smem:[#allocation9_spill]]  ;;  %vm339_vm6 = vcmask 1040384  }
  0x20   :  { %163 = vmatpush1.msra.mxu0 %v103_v11  ;;  %v95_v19 = vld [vmem:[%s5030_s8 + $0x8] sm:$0xff]  ;;  %v94_v20 = vld [vmem:[%s5030_s8] sm:$0xff]  ;;  %v117_v21 = vld [vmem:[%s5030_s8 + $0xb8] sm:$0xff]  ;;  %s5037_s30 = sld [smem:[#allocation10_spill]]  ;;  %vm341_vm7 = vcmask 1042432   ;;  %vm343_vm8 = vcmask 1046528  }
  0x21   :  { %164 = vmatprep.subr.mxu0 %v4032_v1  ;;  %v116_v22 = vld [vmem:[%s5030_s8 + $0xb0] sm:$0xff]  ;;  %v115_v23 = vld [vmem:[%s5030_s8 + $0xa8] sm:$0xff]  ;;  %v114_v24 = vld [vmem:[%s5030_s8 + $0xa0] sm:$0xff]  ;;  %v239_v63 = vsub.s32 0, %v238_v62  ;;  %s5038_s28 = sld [smem:[#allocation16_spill]]  ;;  %vm499_vm9 = vcmask 64512  }
  0x22   :  { %165 = vmatpush1.msra.mxu0 %v102_v12  ;;  %v113_v25 = vld [vmem:[%s5030_s8 + $0x98] sm:$0xff]  ;;  %v112_v26 = vld [vmem:[%s5030_s8 + $0x90] sm:$0xff]  ;;  %v111_v27 = vld [vmem:[%s5030_s8 + $0x88] sm:$0xff]  ;;  %s4035_s3 = smov 64   ;;  %s4036_s7 = smov 88   ;;  %vm1320_vm10 = vcmask 195584  }
  0x23   :  { %166 = vmatprep.subr.mxu0 %v4032_v1  ;;  %v110_v28 = vld [vmem:[%s5030_s8 + $0x80] sm:$0xff]  ;;  %s5012_s9 = smov 56   ;;  %s5004_s0 = smov 72   ;;  %vm1752_vm11 = vcmask 15360   ;;  %vm1759_vm12 = vcmask 1041408   ;;  %vm3206_vm13 = vcmask 254976  }
  0x24   :  { %167 = vmatpush1.msra.mxu0 %v101_v13  ;;  %v92_v29 = vld [vmem:[%s5031_s2] sm:$0xff]  ;;  %s5039_s2 = sld [smem:[#allocation11_spill]]  ;;  %s5002_s8 = smov 104   ;;  %vm3313_vm14 = vcmask 123904  }
  0x25   :  { %168 = vmatprep.subr.mxu0 %v4032_v1  ;;  %v140_v30 = vld [vmem:[%s5034_s5 + $0x1] sm:$0xf]  ;;  %v118_v32 = vld [vmem:[%s5035_s10] sm:$0x1]  ;;  %s4034_s10 = smov 96   ;;  %s5006_s1 = smov 48  }
  0x26   :  { %169 = vmatpush1.msra.mxu0 %v100_v14  ;;  %v142_v31 = vrot.slane %v140_v30, 4  ;;  %v119_v33 = vld [vmem:[%s5034_s5] sm:$0x1]  ;;  %s5010_s5 = smov 80   ;;  %s5000_s6 = smov 40  }
  0x27   :  { %170 = vmatprep.subr.mxu0 %v4032_v1  ;;  %v120_v35 = vadd.f32 %v119_v33, %v118_v32  ;;  %v87_v0 = vld [vmem:[%s5036_s11] sm:$0x1]  ;;  %v403_v32 = vld [vmem:[%s4976_s14 + $0x10] sm:$0xff]  ;;  %v402_v33 = vld [vmem:[%s4976_s14 + $0x8] sm:$0xff]  ;;  %s4998_s11 = smov 8  }
  0x28   :  { %171 = vmatpush1.msra.mxu0 %v99_v15  ;;  %v145_v34 = vsel %vm144_vm3, %v140_v30, %v142_v31  ;;  %v88_v3 = vld [vmem:[%s5037_s30] sm:$0x1]  ;;  %v240_v4 = vrot.slane %v87_v0, %v239_v63  ;;  %v404_v31 = vld [vmem:[%s4976_s14 + $0x18] sm:$0xff]  ;;  %s4037_s30 = smov 120  }
  0x29   :  { %172 = vmatprep.subr.mxu0 %v4032_v1  ;;  %v127_v41 = vmul.f32 %v120_v35, %v120_v35  ;;  %v122_v43 = vsel %vm121_vm5, %v120_v35, 0.0  ;;  %v4326_v6 = vld [vmem:[%s5038_s28] ss:$0 sm:$0xff]  ;;  %v247_v8 = vrot.slane %v88_v3, %v239_v63  ;;  %s5008_s28 = smov 112  }
  0x2a   :  { %173 = vmatpush1.msra.mxu0 %v98_v16 }
  0x2b   :  { %174 = vmatprep.subr.mxu0 %v4032_v1  ;;  %v128_v44 = vsel %vm121_vm5, %v127_v41, 0.0 }
  0x2c   :  { %175 = vmatpush1.msra.mxu0 %v97_v17 }
  0x2d   :  { %176 = vmatprep.subr.mxu0 %v4032_v1 }
  0x2e   :  { %177 = vmatpush1.msra.mxu0 %v96_v18 }
  0x2f   :  { %178 = vmatprep.subr.mxu0 %v4032_v1 }
  0x30   :  { %179 = vmatpush1.msra.mxu0 %v95_v19 }
  0x31   :  { %180 = vmatprep.subr.mxu0 %v4032_v1 }
  0x32   :  { %181 = vmatpush1.msra.mxu0 %v94_v20 }
  0x33   :  { %198 = vmatprep.subr.mxu0 %v4032_v1 }
  0x34   :  { %199 = vmatpush2.msra.mxu0 %v117_v21 }
  0x35   :  { %200 = vmatprep.subr.mxu0 %v4032_v1 }
  0x36   :  { %201 = vmatpush2.msra.mxu0 %v116_v22 }
  0x37   :  { %202 = vmatprep.subr.mxu0 %v4032_v1 }
  0x38   :  { %203 = vmatpush2.msra.mxu0 %v115_v23 }
  0x39   :  { %204 = vmatprep.subr.mxu0 %v4032_v1 }
  0x3a   :  { %205 = vmatpush2.msra.mxu0 %v114_v24 }
  0x3b   :  { %206 = vmatprep.subr.mxu0 %v4032_v1 }
  0x3c   :  { %207 = vmatpush2.msra.mxu0 %v113_v25 }
  0x3d   :  { %208 = vmatprep.subr.mxu0 %v4032_v1 }
  0x3e   :  { %209 = vmatpush2.msra.mxu0 %v112_v26 }
  0x3f   :  { %210 = vmatprep.subr.mxu0 %v4032_v1 }
  0x40   :  { %211 = vmatpush2.msra.mxu0 %v111_v27 }
  0x41   :  { %212 = vmatprep.subr.mxu0 %v4032_v1 }
  0x42   :  { %213 = vmatpush2.msra.mxu0 %v110_v28 }
  0x43   :  { %215 = vmatmul.mubr.f32.vlgmr.msra.gmra.mxu0 %v92_v29  ;;  %3613 = vmatprep.subr.mxu0 %v404_v31 }
  0x44   :  { %3614 = vmatpush3.msra.mxu0 %v404_v31 }
  0x45   :  { %3615 = vmatprep.subr.mxu0 %v403_v32 }
  0x46   :  { %3616 = vmatpush3.msra.mxu0 %v403_v32 }
  0x47   :  { %3617 = vmatprep.subr.mxu0 %v402_v33 }
  0x48   :  { %3618 = vmatpush3.msra.mxu0 %v402_v33 }
  0xdf   :  { %v327_v45 = vpop.f32.mrf.mxu1 }
  0xe0   :  { %v328_v10 = vadd.f32 %v4326_v6, %v327_v45 }
  0xe1   :  { %v3612_v46 = vpop.f32.mrf.mxu1 }
  0xe2   :  { %v332_v16 = vrot.slane %v328_v10, 7 }
 0x103   :  { %v216_v36 = vpop.f32.mrf.mxu0 }
 0x104   :  { %v217_v37 = vadd.f32 %v216_v36, %v145_v34  ;;  %v401_v34 = vld [vmem:[%s4976_s14] sm:$0xff] }
 0x105   :  { %v218_v38 = vpop.f32.mrf.mxu0  ;;  %3619 = vmatprep.subr.mxu0 %v401_v34 }
 0x106   :  { %v221_v39 = vsel %vm220_vm4, %v217_v37, 0.0  ;;  %v225_v40 = vmul.f32 %v217_v37, %v217_v37  ;;  %3620 = vmatpush3.msra.mxu0 %v401_v34 }
 0x107   :  { %222 = vadd.xlane.f32.xlu0 %v221_v39 }
 0x108   :  { %v226_v42 = vsel %vm220_vm4, %v225_v40, 0.0 }
 0x109   :  { %227 = vadd.xlane.f32.xlu1 %v226_v42 }
 0x10b   :  { %123 = vadd.xlane.f32.xlu0 %v122_v43 }
 0x10d   :  { %129 = vadd.xlane.f32.xlu1 %v128_v44 }
 0x190   :  { %v223_v47 = vpop.xlane.xlu0 %222 }
 0x191   :  { %v224_v48 = vmul.f32 0.03125, %v223_v47 }
 0x192   :  { %v228_v49 = vpop.xlane.xlu1 %227 }
 0x193   :  { %v230_v50 = vmul.f32 %v224_v48, %v224_v48  ;;  %v229_v51 = vmul.f32 0.03125, %v228_v49  ;;  %v232_v2 = vsub.f32 %v217_v37, %v224_v48 }
 0x194   :  { %v124_v52 = vpop.xlane.xlu0 %123 }
 0x195   :  { %v231_v53 = vsub.f32 %v229_v51, %v230_v50  ;;  %v126_v54 = vmul.f32 0.03125, %v124_v52  ;;  %v3332_v52 = vld [vmem:[%s4974_s12] ss:$0 sm:$0xff] }
 0x196   :  { %v130_v55 = vpop.xlane.xlu1 %129 }
 0x197   :  { %v233_v56 = vadd.f32 1e-05, %v231_v53  ;;  %v132_v57 = vmul.f32 %v126_v54, %v126_v54  ;;  %v131_v58 = vmul.f32 0.03125, %v130_v55  ;;  %v134_v9 = vsub.f32 %v120_v35, %v126_v54  ;;  %v3333_v55 = vld [vmem:[%s4975_s13] ss:$0 sm:$0xff] }
 0x199   :  { %3904 = vrsqrt.f32 %v233_v56  ;;  %v133_v59 = vsub.f32 %v131_v58, %v132_v57 }
 0x19b   :  { %v135_v61 = vadd.f32 1e-05, %v133_v59 }
 0x19d   :  { %3906 = vrsqrt.f32 %v135_v61  ;;  %v3334_v61 = vld [vmem:[%s4977_s15] ss:$0 sm:$0xff] }
 0x1a6   :  { %v3905_v5 = vpop.eup %3904 }
 0x1a7   :  { %v235_v7 = vmul.f32 %v3905_v5, %v232_v2  ;;  %v4388_v5 = vld [vmem:[%s5039_s2 + $0x8] sm:$0xff] }
 0x1a9   :  { %v242_v11 = vmul.f32 %v240_v4, %v235_v7 }
 0x1aa   :  { %v3907_v12 = vpop.eup %3906 }
 0x1ab   :  { %v137_v13 = vmul.f32 %v3907_v12, %v134_v9  ;;  %v249_v14 = vadd.f32 %v247_v8, %v242_v11  ;;  %v4393_v8 = vld [vmem:[%s5039_s2] sm:$0xff] }
 0x1ad   :  { %v138_v15 = vmul.f32 %v137_v13, %v87_v0  ;;  %v337_v18 = vrot.slane %v249_v14, 1  ;;  %v335_v19 = vrot.slane %v249_v14, 5 }
 0x1af   :  { %v139_v17 = vadd.f32 %v138_v15, %v88_v3 }
 0x1b1   :  { %v340_v20 = vsel %vm339_vm6, %v139_v17, %v332_v16 }
 0x1b2   :  { %v345_v21 = vsel %vm341_vm7, %v340_v20, %v337_v18  ;;  %v342_v22 = vsel %vm341_vm7, %v340_v20, %v335_v19 }
 0x1b3   :  { %v4330_v23 = vsel %vm343_vm8, %v345_v21, 0.0  ;;  %v4332_v24 = vsel %vm343_vm8, %v342_v22, 0.0 }
 0x1b4   :  { %v358_v25 = vsel %vm220_vm4, %v4330_v23, 0.0  ;;  %v355_v26 = vsel %vm220_vm4, %v4332_v24, 0.0  ;;  %v364_v27 = vmul.f32 %v4330_v23, %v4330_v23  ;;  %v363_v28 = vmul.f32 %v4332_v24, %v4332_v24 }
 0x1b5   :  { %359 = vadd.xlane.f32.xlu1 %v358_v25  ;;  %356 = vadd.xlane.f32.xlu0 %v355_v26 }
 0x1b6   :  { %v368_v29 = vsel %vm220_vm4, %v364_v27, 0.0  ;;  %v365_v30 = vsel %vm220_vm4, %v363_v28, 0.0 }
 0x1b9   :  { %369 = vadd.xlane.f32.xlu1 %v368_v29  ;;  %366 = vadd.xlane.f32.xlu0 %v365_v30 }
 0x23e   :  { %v360_v35 = vpop.xlane.xlu1 %359  ;;  %v357_v36 = vpop.xlane.xlu0 %356 }
 0x23f   :  { %v362_v37 = vmul.f32 0.03125, %v360_v35  ;;  %v361_v38 = vmul.f32 0.03125, %v357_v36 }
 0x241   :  { %v374_v41 = vmul.f32 %v362_v37, %v362_v37  ;;  %v373_v42 = vmul.f32 %v361_v38, %v361_v38  ;;  %v378_v49 = vsub.f32 %v4330_v23, %v362_v37  ;;  %v377_v51 = vsub.f32 %v4332_v24, %v361_v38 }
 0x242   :  { %v370_v39 = vpop.xlane.xlu1 %369  ;;  %v367_v40 = vpop.xlane.xlu0 %366 }
 0x243   :  { %v372_v43 = vmul.f32 0.03125, %v370_v39  ;;  %v371_v44 = vmul.f32 0.03125, %v367_v40 }
 0x245   :  { %v376_v45 = vsub.f32 %v372_v43, %v374_v41  ;;  %v375_v46 = vsub.f32 %v371_v44, %v373_v42 }
 0x247   :  { %v380_v47 = vadd.f32 1e-05, %v376_v45  ;;  %v379_v48 = vadd.f32 1e-05, %v375_v46 }
 0x249   :  { %3908 = vrsqrt.f32 %v380_v47 }
 0x24a   :  { %3910 = vrsqrt.f32 %v379_v48 }
 0x256   :  { %v3909_v50 = vpop.eup %3908 }
 0x257   :  { %v3911_v53 = vpop.eup %3910  ;;  %v384_v54 = vmul.f32 %v3909_v50, %v378_v49 }
 0x258   :  { %v383_v56 = vmul.f32 %v3911_v53, %v377_v51 }
 0x259   :  { %v392_v57 = vmul.f32 %v3332_v52, %v384_v54 }
 0x25a   :  { %v391_v58 = vmul.f32 %v3332_v52, %v383_v56 }
 0x25b   :  { %v400_v59 = vadd.f32 %v3333_v55, %v392_v57 }
 0x25c   :  { %v399_v60 = vadd.f32 %v3333_v55, %v391_v58 }
 0x25e   :  { %3621 = vmatprep.mubr.msk.f32.mxu0 %vm220_vm4, %v399_v60 }
 0x25f   :  { %3622 = vmatmul.mubr.msk.f32.vlgmr.msra.gmra.mxu0 %vm220_vm4, %v400_v59 }
 0x31f   :  { %v3623_v62 = vpop.f32.mrf.mxu0 }
 0x320   :  { %v4369_v63 = vadd.f32 %v3623_v62, %v3334_v61 }
 0x321   :  { %v484_v0 = vpop.f32.mrf.mxu0 }
 0x322   :  { %v4371_v2 = vadd.f32 %v3334_v61, %v484_v0  ;;  %497 = vrot.lane.b32.xlu0 %v4369_v63, %s4034_s10 }
 0x324   :  { %495 = vrot.lane.b32.xlu1 %v4371_v2, %s4034_s10  ;;  %3628 = vmatprep.mubr.msk.f32.mxu1 %vm499_vm9, %v4371_v2 }
 0x394   :  { %v498_v3 = vpop.permute.xlu0 %497 }
 0x395   :  { %3624 = vmatprep.subr.msk.mxu1 %vm499_vm9, %v498_v3 }
 0x396   :  { %3625 = vmatpush3.xpose.msk.msra.mxu1 %vm499_vm9, %v498_v3  ;;  %v496_v4 = vpop.permute.xlu1 %495 }
 0x397   :  { %3626 = vmatprep.subr.msk.mxu1 %vm499_vm9, %v496_v4 }
 0x39a   :  { %3627 = vmatpush3.xpose.msk.msra.mxu1 %vm499_vm9, %v496_v4 }
 0x39d   :  { %3629 = vmatmul.mubr.msk.f32.vlgmr.msra.gmra.mxu1 %vm499_vm9, %v4369_v63 }
 0x45d   :  { %v3630_v7 = vpop.f32.mrf.mxu1 }
 0x45e   :  { %v580_v9 = vadd.f32 %v3630_v7, %v4388_v5 }
 0x45f   :  { %v574_v10 = vpop.f32.mrf.mxu1 }
 0x460   :  { %v575_v11 = vadd.f32 %v574_v10, %v4393_v8  ;;  %v586_v12 = vsel %vm257_vm2, %v580_v9, -inf }
 0x461   :  { %587 = vmax.xlane.f32.xlu0 %v586_v12 }
 0x462   :  { %v583_v13 = vsel %vm257_vm2, %v575_v11, -inf }
 0x463   :  { %584 = vmax.xlane.f32.xlu1 %v583_v13 }
 0x4ea   :  { %v588_v14 = vpop.xlane.xlu0 %587 }
 0x4eb   :  { %v590_v15 = vsub.f32 %v580_v9, %v588_v14 }
 0x4ec   :  { %v585_v16 = vpop.xlane.xlu1 %584 }
 0x4ed   :  { %v593_v17 = vmul.f32 1.442695, %v590_v15  ;;  %v589_v18 = vsub.f32 %v575_v11, %v585_v16 }
 0x4ef   :  { %3912 = vpow2.f32 %v593_v17  ;;  %v591_v19 = vmul.f32 1.442695, %v589_v18 }
 0x4f1   :  { %3914 = vpow2.f32 %v591_v19 }
 0x4fc   :  { %v3913_v20 = vpop.eup %3912 }
 0x4fd   :  { %v598_v21 = vsel %vm257_vm2, %v3913_v20, 0.0 }
 0x4fe   :  { %v3915_v22 = vpop.eup %3914  ;;  %599 = vadd.xlane.f32.xlu1 %v598_v21 }
 0x4ff   :  { %v595_v25 = vsel %vm257_vm2, %v3915_v22, 0.0 }
 0x500   :  { %596 = vadd.xlane.f32.xlu0 %v595_v25 }
 0x50f   :  { %605 = vrot.lane.b32.xlu1 %v4371_v2, %s4035_s3 }
 0x513   :  { %698 = vrot.lane.b32.xlu1 %v4369_v63, %s4036_s7 }
 0x516   :  { %607 = vrot.lane.b32.xlu0 %v4369_v63, %s4035_s3 }
 0x517   :  { %696 = vrot.lane.b32.xlu1 %v4371_v2, %s4036_s7 }
 0x51a   :  { %692 = vrot.lane.b32.xlu0 %v4371_v2, %s4037_s30 }
 0x51b   :  { %694 = vrot.lane.b32.xlu1 %v4369_v63, %s4037_s30 }
 0x587   :  { %v600_v26 = vpop.xlane.xlu1 %599 }
 0x588   :  { %3916 = vrcp.f32 %v600_v26 }
 0x589   :  { %v597_v27 = vpop.xlane.xlu0 %596 }
 0x58a   :  { %3918 = vrcp.f32 %v597_v27 }
 0x58b   :  { %v606_v28 = vpop.permute.xlu1 %605 }
 0x58d   :  { %v608_v29 = vpop.permute.xlu0 %607 }
 0x58e   :  { %3631 = vmatprep.subr.mxu1 %v608_v29 }
 0x58f   :  { %3632 = vmatpush3.msra.mxu1 %v608_v29  ;;  %v699_v30 = vpop.permute.xlu1 %698 }
 0x590   :  { %3633 = vmatprep.subr.mxu1 %v606_v28 }
 0x591   :  { %3634 = vmatpush3.msra.mxu1 %v606_v28  ;;  %v693_v35 = vpop.permute.xlu0 %692 }
 0x592   :  { %3638 = vmatprep.subr.msk.mxu1 %vm499_vm9, %v699_v30 }
 0x593   :  { %v697_v36 = vpop.permute.xlu1 %696 }
 0x595   :  { %v3917_v31 = vpop.eup %3916 }
 0x596   :  { %v604_v34 = vmul.f32 %v3917_v31, %v3913_v20 }
 0x597   :  { %v3919_v32 = vpop.eup %3918  ;;  %v695_v37 = vpop.permute.xlu1 %694 }
 0x598   :  { %v602_v33 = vmul.f32 %v3919_v32, %v3915_v22 }
 0x59a   :  { %3635 = vmatprep.mubr.msk.f32.mxu1 %vm257_vm2, %v602_v33 }
 0x59b   :  { %3636 = vmatmul.mubr.msk.f32.vlgmr.msra.gmra.mxu1 %vm257_vm2, %v604_v34 }
 0x59c   :  { %3639 = vmatpush3.xpose.msk.msra.mxu1 %vm499_vm9, %v699_v30  ;;  %3642 = vmatprep.mubr.msk.f32.mxu1 %vm499_vm9, %v693_v35 }
 0x59d   :  { %3640 = vmatprep.subr.msk.mxu1 %vm499_vm9, %v697_v36 }
 0x5a0   :  { %3641 = vmatpush3.xpose.msk.msra.mxu1 %vm499_vm9, %v697_v36 }
 0x5a3   :  { %3643 = vmatmul.mubr.msk.f32.vlgmr.msra.gmra.mxu1 %vm499_vm9, %v695_v37 }
 0x65b   :  { %v4421_v38 = vpop.f32.mrf.mxu1 }
 0x65d   :  { %v4423_v39 = vpop.f32.mrf.mxu1 }
 0x663   :  { %v3644_v40 = vpop.f32.mrf.mxu1 }
 0x664   :  { %v780_v41 = vadd.f32 %v3644_v40, %v4388_v5 }
 0x665   :  { %v774_v42 = vpop.f32.mrf.mxu1 }
 0x666   :  { %v775_v43 = vadd.f32 %v774_v42, %v4393_v8  ;;  %v786_v44 = vsel %vm257_vm2, %v780_v41, -inf }
 0x667   :  { %787 = vmax.xlane.f32.xlu1 %v786_v44 }
 0x668   :  { %v783_v45 = vsel %vm257_vm2, %v775_v43, -inf }
 0x669   :  { %784 = vmax.xlane.f32.xlu0 %v783_v45 }
 0x678   :  { %805 = vrot.lane.b32.xlu1 %v4371_v2, %s5012_s9 }
 0x67c   :  { %898 = vrot.lane.b32.xlu1 %v4369_v63, %s5010_s5 }
 0x67f   :  { %807 = vrot.lane.b32.xlu0 %v4369_v63, %s5012_s9 }
 0x680   :  { %896 = vrot.lane.b32.xlu1 %v4371_v2, %s5010_s5  ;;  %s5041_s5 = sld [smem:[#allocation13_spill]] }
 0x684   :  { %892 = vrot.lane.b32.xlu1 %v4371_v2, %s5008_s28 }
 0x688   :  { %1096 = vrot.lane.b32.xlu1 %v4371_v2, %s5004_s0 }
 0x68c   :  { %1094 = vrot.lane.b32.xlu1 %v4369_v63, %s5002_s8 }
 0x6f0   :  { %v788_v46 = vpop.xlane.xlu1 %787 }
 0x6f1   :  { %v790_v47 = vsub.f32 %v780_v41, %v788_v46 }
 0x6f2   :  { %v785_v48 = vpop.xlane.xlu0 %784 }
 0x6f3   :  { %v793_v49 = vmul.f32 1.442695, %v790_v47  ;;  %v789_v50 = vsub.f32 %v775_v43, %v785_v48 }
 0x6f4   :  { %v806_v51 = vpop.permute.xlu1 %805 }
 0x6f5   :  { %3920 = vpow2.f32 %v793_v49  ;;  %v791_v52 = vmul.f32 1.442695, %v789_v50 }
 0x6f6   :  { %v808_v53 = vpop.permute.xlu0 %807 }
 0x6f7   :  { %3922 = vpow2.f32 %v791_v52  ;;  %3645 = vmatprep.subr.mxu1 %v808_v53 }
 0x6f8   :  { %3646 = vmatpush3.msra.mxu1 %v808_v53  ;;  %v899_v54 = vpop.permute.xlu1 %898 }
 0x6f9   :  { %3647 = vmatprep.subr.mxu1 %v806_v51 }
 0x6fa   :  { %3648 = vmatpush3.msra.mxu1 %v806_v51 }
 0x6fb   :  { %3652 = vmatprep.subr.msk.mxu1 %vm499_vm9, %v899_v54 }
 0x6fc   :  { %v897_v59 = vpop.permute.xlu1 %896 }
 0x700   :  { %v893_v61 = vpop.permute.xlu1 %892 }
 0x702   :  { %v3921_v55 = vpop.eup %3920 }
 0x703   :  { %v798_v56 = vsel %vm257_vm2, %v3921_v55, 0.0 }
 0x704   :  { %v3923_v57 = vpop.eup %3922  ;;  %799 = vadd.xlane.f32.xlu0 %v798_v56  ;;  %v1097_v3 = vpop.permute.xlu1 %1096 }
 0x705   :  { %v795_v58 = vsel %vm257_vm2, %v3923_v57, 0.0 }
 0x708   :  { %796 = vadd.xlane.f32.xlu0 %v795_v58  ;;  %v1095_v10 = vpop.permute.xlu1 %1094 }
 0x71e   :  { %1098 = vrot.lane.b32.xlu0 %v4369_v63, %s5004_s0  ;;  %s5014_s0 = smov 24  }
 0x722   :  { %894 = vrot.lane.b32.xlu0 %v4369_v63, %s5008_s28  ;;  %s5047_s28 = smov 104  }
 0x726   :  { %1092 = vrot.lane.b32.xlu0 %v4371_v2, %s5002_s8  ;;  %s5048_s8 = smov 40  }
 0x78d   :  { %v800_v60 = vpop.xlane.xlu0 %799 }
 0x78e   :  { %3924 = vrcp.f32 %v800_v60 }
 0x791   :  { %v797_v62 = vpop.xlane.xlu0 %796 }
 0x792   :  { %3926 = vrcp.f32 %v797_v62 }
 0x795   :  { %v1099_v0 = vpop.permute.xlu0 %1098 }
 0x796   :  { %3666 = vmatprep.subr.msk.mxu0 %vm499_vm9, %v1099_v0 }
 0x797   :  { %3667 = vmatpush3.xpose.msk.msra.mxu0 %vm499_vm9, %v1099_v0 }
 0x798   :  { %3668 = vmatprep.subr.msk.mxu0 %vm499_vm9, %v1097_v3 }
 0x799   :  { %v895_v4 = vpop.permute.xlu0 %894 }
 0x79b   :  { %3669 = vmatpush3.xpose.msk.msra.mxu0 %vm499_vm9, %v1097_v3  ;;  %v3925_v9 = vpop.eup %3924 }
 0x79c   :  { %v804_v13 = vmul.f32 %v3925_v9, %v3921_v55  ;;  %v1325_v9 = vld [vmem:[%s4978_s16 + $0x10] sm:$0xff] }
 0x79d   :  { %v1093_v7 = vpop.permute.xlu0 %1092 }
 0x79e   :  { %3670 = vmatprep.mubr.msk.f32.mxu0 %vm499_vm9, %v1093_v7  ;;  %v1326_v7 = vld [vmem:[%s4978_s16 + $0x18] sm:$0xff] }
 0x79f   :  { %v3927_v11 = vpop.eup %3926  ;;  %3671 = vmatmul.mubr.msk.f32.vlgmr.msra.gmra.mxu0 %vm499_vm9, %v1095_v10  ;;  %v1324_v10 = vld [vmem:[%s4978_s16 + $0x8] sm:$0xff] }
 0x7a0   :  { %v802_v12 = vmul.f32 %v3927_v11, %v3923_v57  ;;  %v1323_v11 = vld [vmem:[%s4978_s16] sm:$0xff] }
 0x7a2   :  { %3649 = vmatprep.mubr.msk.f32.mxu1 %vm257_vm2, %v802_v12 }
 0x7a3   :  { %3650 = vmatmul.mubr.msk.f32.vlgmr.msra.gmra.mxu1 %vm257_vm2, %v804_v13 }
 0x7a4   :  { %3653 = vmatpush3.xpose.msk.msra.mxu1 %vm499_vm9, %v899_v54  ;;  %3656 = vmatprep.mubr.msk.f32.mxu1 %vm499_vm9, %v893_v61 }
 0x7a5   :  { %3654 = vmatprep.subr.msk.mxu1 %vm499_vm9, %v897_v59 }
 0x7a8   :  { %3655 = vmatpush3.xpose.msk.msra.mxu1 %vm499_vm9, %v897_v59 }
 0x7ab   :  { %3657 = vmatmul.mubr.msk.f32.vlgmr.msra.gmra.mxu1 %vm499_vm9, %v895_v4 }
 0x85f   :  { %v3672_v15 = vpop.f32.mrf.mxu0 }
 0x860   :  { %v1180_v27 = vadd.f32 %v3672_v15, %v4388_v5 }
 0x861   :  { %v1174_v19 = vpop.f32.mrf.mxu0 }
 0x862   :  { %v1175_v25 = vadd.f32 %v1174_v19, %v4393_v8  ;;  %v1186_v29 = vsel %vm257_vm2, %v1180_v27, -inf }
 0x863   :  { %v3651_v14 = vpop.f32.mrf.mxu1 }
 0x864   :  { %v1183_v28 = vsel %vm257_vm2, %v1175_v25, -inf }
 0x865   :  { %v883_v16 = vpop.f32.mrf.mxu1 }
 0x86b   :  { %v3658_v17 = vpop.f32.mrf.mxu1 }
 0x86c   :  { %v980_v18 = vadd.f32 %v3658_v17, %v4388_v5 }
 0x86d   :  { %v974_v20 = vpop.f32.mrf.mxu1 }
 0x86e   :  { %v975_v21 = vadd.f32 %v974_v20, %v4393_v8  ;;  %v986_v22 = vsel %vm257_vm2, %v980_v18, -inf }
 0x86f   :  { %987 = vmax.xlane.f32.xlu1 %v986_v22 }
 0x870   :  { %v983_v26 = vsel %vm257_vm2, %v975_v21, -inf }
 0x871   :  { %984 = vmax.xlane.f32.xlu0 %v983_v26 }
 0x875   :  { %1184 = vmax.xlane.f32.xlu0 %v1183_v28 }
 0x879   :  { %1187 = vmax.xlane.f32.xlu0 %v1186_v29 }
 0x8f8   :  { %v988_v32 = vpop.xlane.xlu1 %987 }
 0x8f9   :  { %v990_v35 = vsub.f32 %v980_v18, %v988_v32 }
 0x8fa   :  { %v985_v30 = vpop.xlane.xlu0 %984 }
 0x8fb   :  { %v989_v31 = vsub.f32 %v975_v21, %v985_v30  ;;  %v993_v42 = vmul.f32 1.442695, %v990_v35 }
 0x8fd   :  { %v991_v36 = vmul.f32 1.442695, %v989_v31 }
 0x8fe   :  { %v1185_v33 = vpop.xlane.xlu0 %1184 }
 0x8ff   :  { %v1189_v34 = vsub.f32 %v1175_v25, %v1185_v33 }
 0x901   :  { %v1191_v37 = vmul.f32 1.442695, %v1189_v34 }
 0x902   :  { %v1188_v40 = vpop.xlane.xlu0 %1187 }
 0x903   :  { %3928 = vpow2.f32 %v1191_v37  ;;  %v1190_v41 = vsub.f32 %v1180_v27, %v1188_v40 }
 0x904   :  { %3930 = vpow2.f32 %v991_v36 }
 0x905   :  { %v1193_v43 = vmul.f32 1.442695, %v1190_v41  ;;  %v1470_v41 = vld [vmem:[%s4982_s20 + $0x18] sm:$0xff] }
 0x906   :  { %3691 = vmatprep.subr.mxu0 %v1470_v41 }
 0x907   :  { %3932 = vpow2.f32 %v1193_v43  ;;  %3692 = vmatpush3.msra.mxu0 %v1470_v41  ;;  %v1468_v43 = vld [vmem:[%s4982_s20 + $0x8] sm:$0xff] }
 0x908   :  { %3934 = vpow2.f32 %v993_v42  ;;  %v1469_v42 = vld [vmem:[%s4982_s20 + $0x10] sm:$0xff] }
 0x909   :  { %3693 = vmatprep.subr.mxu0 %v1469_v42 }
 0x90a   :  { %3694 = vmatpush3.msra.mxu0 %v1469_v42 }
 0x90b   :  { %3695 = vmatprep.subr.mxu0 %v1468_v43 }
 0x90c   :  { %3696 = vmatpush3.msra.mxu0 %v1468_v43 }
 0x910   :  { %v3929_v44 = vpop.eup %3928 }
 0x911   :  { %v1195_v45 = vsel %vm257_vm2, %v3929_v44, 0.0  ;;  %v3931_v46 = vpop.eup %3930 }
 0x912   :  { %1196 = vadd.xlane.f32.xlu0 %v1195_v45  ;;  %v995_v48 = vsel %vm257_vm2, %v3931_v46, 0.0 }
 0x914   :  { %v3933_v47 = vpop.eup %3932 }
 0x915   :  { %v1198_v49 = vsel %vm257_vm2, %v3933_v47, 0.0  ;;  %v3935_v50 = vpop.eup %3934 }
 0x916   :  { %996 = vadd.xlane.f32.xlu0 %v995_v48  ;;  %1199 = vadd.xlane.f32.xlu1 %v1198_v49  ;;  %v998_v51 = vsel %vm257_vm2, %v3935_v50, 0.0 }
 0x91a   :  { %999 = vadd.xlane.f32.xlu1 %v998_v51 }
 0x92b   :  { %1005 = vrot.lane.b32.xlu1 %v4371_v2, %s5006_s1 }
 0x92c   :  { %1007 = vrot.lane.b32.xlu0 %v4369_v63, %s5006_s1  ;;  %s5049_s1 = smov 8  }
 0x92f   :  { %1207 = vrot.lane.b32.xlu1 %v4369_v63, %s5000_s6 }
 0x930   :  { %1294 = vrot.lane.b32.xlu0 %v883_v16, %s4998_s11 }
 0x933   :  { %1205 = vrot.lane.b32.xlu1 %v4371_v2, %s5000_s6  ;;  %s5016_s6 = smov 16  }
 0x937   :  { %1296 = vrot.lane.b32.xlu1 %v3651_v14, %s4998_s11  ;;  %s5050_s11 = smov 16  }
 0x99b   :  { %v1197_v52 = vpop.xlane.xlu0 %1196 }
 0x99f   :  { %v1200_v53 = vpop.xlane.xlu1 %1199  ;;  %v997_v54 = vpop.xlane.xlu0 %996 }
 0x9a0   :  { %3936 = vrcp.f32 %v997_v54 }
 0x9a1   :  { %3938 = vrcp.f32 %v1197_v52 }
 0x9a3   :  { %v1000_v55 = vpop.xlane.xlu1 %999  ;;  %v1008_v56 = vpop.permute.xlu0 %1007 }
 0x9a4   :  { %3940 = vrcp.f32 %v1000_v55  ;;  %3659 = vmatprep.subr.mxu1 %v1008_v56 }
 0x9a5   :  { %3660 = vmatpush3.msra.mxu1 %v1008_v56  ;;  %3942 = vrcp.f32 %v1200_v53 }
 0x9a7   :  { %v1006_v63 = vpop.permute.xlu1 %1005  ;;  %v1295_v17 = vpop.permute.xlu0 %1294 }
 0x9a8   :  { %3661 = vmatprep.subr.mxu1 %v1006_v63  ;;  %v1316_v20 = vsel %vm499_vm9, %v4423_v39, %v1295_v17  ;;  %v3363_v39 = vld [vmem:[%s4979_s17] ss:$0 sm:$0xff] }
 0x9a9   :  { %3662 = vmatpush3.msra.mxu1 %v1006_v63  ;;  %v1587_v17 = vld [vmem:[%s4984_s22 + $0x60] sm:$0xff] }
 0x9ab   :  { %v1208_v57 = vpop.permute.xlu1 %1207 }
 0x9ac   :  { %3673 = vmatprep.subr.mxu1 %v1208_v57 }
 0x9ad   :  { %v3937_v58 = vpop.eup %3936 }
 0x9ae   :  { %v1002_v2 = vmul.f32 %v3937_v58, %v3931_v46  ;;  %v3939_v59 = vpop.eup %3938 }
 0x9af   :  { %v1202_v0 = vmul.f32 %v3939_v59, %v3929_v44  ;;  %v1206_v3 = vpop.permute.xlu1 %1205  ;;  %v1467_v44 = vld [vmem:[%s4982_s20] sm:$0xff] }
 0x9b0   :  { %3663 = vmatprep.mubr.msk.f32.mxu1 %vm257_vm2, %v1002_v2  ;;  %3697 = vmatprep.subr.mxu0 %v1467_v44  ;;  %v3364_v59 = vld [vmem:[%s4980_s18] ss:$0 sm:$0xff] }
 0x9b1   :  { %v3941_v60 = vpop.eup %3940  ;;  %3698 = vmatpush3.msra.mxu0 %v1467_v44 }
 0x9b2   :  { %v1004_v61 = vmul.f32 %v3941_v60, %v3935_v50  ;;  %v3943_v62 = vpop.eup %3942  ;;  %3737 = vmatprep.subr.mxu0 %v4032_v1 }
 0x9b3   :  { %v1204_v4 = vmul.f32 %v3943_v62, %v3933_v47  ;;  %v1297_v16 = vpop.permute.xlu1 %1296 }
 0x9b4   :  { %3664 = vmatmul.mubr.msk.f32.vlgmr.msra.gmra.mxu1 %vm257_vm2, %v1004_v61  ;;  %v1317_v22 = vsel %vm499_vm9, %v4421_v38, %v1297_v16  ;;  %v3365_v61 = vld [vmem:[%s4981_s19] ss:$0 sm:$0xff]  ;;  %v1588_v16 = vld [vmem:[%s4984_s22 + $0x68] sm:$0xff] }
 0x9b5   :  { %3674 = vmatpush3.msra.mxu1 %v1208_v57  ;;  %3677 = vmatprep.mubr.msk.f32.mxu1 %vm257_vm2, %v1202_v0 }
 0x9b6   :  { %3675 = vmatprep.subr.mxu1 %v1206_v3 }
 0x9b7   :  { %3676 = vmatpush3.msra.mxu1 %v1206_v3 }
 0x9b8   :  { %3678 = vmatmul.mubr.msk.f32.vlgmr.msra.gmra.mxu1 %vm257_vm2, %v1204_v4  ;;  %3680 = vmatprep.subr.mxu1 %v1326_v7 }
 0x9b9   :  { %3681 = vmatpush3.msra.mxu1 %v1326_v7 }
 0x9ba   :  { %3682 = vmatprep.subr.mxu1 %v1325_v9 }
 0x9bb   :  { %3683 = vmatpush3.msra.mxu1 %v1325_v9 }
 0x9bc   :  { %3684 = vmatprep.subr.mxu1 %v1324_v10 }
 0x9bd   :  { %3685 = vmatpush3.msra.mxu1 %v1324_v10 }
 0x9be   :  { %3686 = vmatprep.subr.mxu1 %v1323_v11 }
 0x9bf   :  { %3687 = vmatpush3.msra.mxu1 %v1323_v11  ;;  %v4006_v11 = vld [vmem:[%s5032_s4 + $0x8] sm:$0xff] }
 0xa74   :  { %v3665_v12 = vpop.f32.mrf.mxu1 }
 0xa75   :  { %1304 = vrot.lane.b32.xlu1 %v3665_v12, %s5016_s6  ;;  %v3372_v12 = vld [vmem:[%s5033_s29 + $0x2] sm:$0x3]  ;;  %s5040_s29 = sld [smem:[#allocation12_spill]] }
 0xa76   :  { %v1083_v13 = vpop.f32.mrf.mxu1 }
 0xa77   :  { %1302 = vrot.lane.b32.xlu0 %v1083_v13, %s5016_s6  ;;  %v4007_v13 = vld [vmem:[%s5032_s4] sm:$0xff] }
 0xa78   :  { %v3679_v14 = vpop.f32.mrf.mxu1 }
 0xa79   :  { %1312 = vrot.lane.b32.xlu1 %v3679_v14, %s5014_s0  ;;  %v1590_v14 = vld [vmem:[%s4984_s22 + $0x78] sm:$0xff] }
 0xa7a   :  { %v1283_v15 = vpop.f32.mrf.mxu1  ;;  %3702 = vmatprep.subr.mxu1 %v1590_v14 }
 0xa7b   :  { %1310 = vrot.lane.b32.xlu0 %v1283_v15, %s5014_s0  ;;  %v1589_v15 = vld [vmem:[%s4984_s22 + $0x70] sm:$0xff]  ;;  %s5046_s0 = smov 72  }
 0xae7   :  { %v1305_v18 = vpop.permute.xlu1 %1304 }
 0xae8   :  { %v1319_v27 = vsel %vm257_vm2, %v1317_v22, %v1305_v18  ;;  %v1586_v18 = vld [vmem:[%s4984_s22 + $0x58] sm:$0xff] }
 0xae9   :  { %v1303_v19 = vpop.permute.xlu0 %1302  ;;  %v1582_v22 = vld [vmem:[%s4984_s22 + $0x38] sm:$0xff] }
 0xaea   :  { %v1318_v25 = vsel %vm257_vm2, %v1316_v20, %v1303_v19  ;;  %v1585_v19 = vld [vmem:[%s4984_s22 + $0x50] sm:$0xff]  ;;  %v1584_v20 = vld [vmem:[%s4984_s22 + $0x48] sm:$0xff] }
 0xaeb   :  { %v1313_v21 = vpop.permute.xlu1 %1312 }
 0xaec   :  { %v1322_v29 = vsel %vm1320_vm10, %v1319_v27, %v1313_v21  ;;  %v1583_v21 = vld [vmem:[%s4984_s22 + $0x40] sm:$0xff] }
 0xaed   :  { %v1311_v26 = vpop.permute.xlu0 %1310  ;;  %v1579_v27 = vld [vmem:[%s4984_s22 + $0x20] sm:$0xff] }
 0xaee   :  { %v1321_v28 = vsel %vm1320_vm10, %v1318_v25, %v1311_v26  ;;  %v1581_v25 = vld [vmem:[%s4984_s22 + $0x30] sm:$0xff]  ;;  %v1580_v26 = vld [vmem:[%s4984_s22 + $0x28] sm:$0xff] }
 0xaef   :  { %3688 = vmatprep.mubr.msk.f32.mxu1 %vm220_vm4, %v1321_v28  ;;  %v1578_v28 = vld [vmem:[%s4984_s22 + $0x18] sm:$0xff] }
 0xaf0   :  { %3689 = vmatmul.mubr.msk.f32.vlgmr.msra.gmra.mxu1 %vm220_vm4, %v1322_v29  ;;  %v1577_v29 = vld [vmem:[%s4984_s22 + $0x10] sm:$0xff] }
 0xaf1   :  { %3703 = vmatpush3.msra.mxu1 %v1590_v14 }
 0xaf2   :  { %3704 = vmatprep.subr.mxu1 %v1589_v15 }
 0xaf3   :  { %3705 = vmatpush3.msra.mxu1 %v1589_v15 }
 0xaf4   :  { %3706 = vmatprep.subr.mxu1 %v1588_v16 }
 0xaf5   :  { %3707 = vmatpush3.msra.mxu1 %v1588_v16 }
 0xaf6   :  { %3708 = vmatprep.subr.mxu1 %v1587_v17 }
 0xaf7   :  { %3709 = vmatpush3.msra.mxu1 %v1587_v17 }
 0xaf8   :  { %3710 = vmatprep.subr.mxu1 %v1586_v18 }
 0xaf9   :  { %3711 = vmatpush3.msra.mxu1 %v1586_v18 }
 0xafa   :  { %3712 = vmatprep.subr.mxu1 %v1585_v19 }
 0xafb   :  { %3713 = vmatpush3.msra.mxu1 %v1585_v19 }
 0xafc   :  { %3714 = vmatprep.subr.mxu1 %v1584_v20 }
 0xafd   :  { %3715 = vmatpush3.msra.mxu1 %v1584_v20 }
 0xafe   :  { %3716 = vmatprep.subr.mxu1 %v1583_v21 }
 0xaff   :  { %3717 = vmatpush3.msra.mxu1 %v1583_v21  ;;  %v3384_v21 = vld [vmem:[%s4976_s14 + $0x38] sm:$0xff] }
 0xb00   :  { %3718 = vmatprep.subr.mxu1 %v1582_v22 }
 0xb01   :  { %3719 = vmatpush3.msra.mxu1 %v1582_v22  ;;  %v3383_v22 = vld [vmem:[%s4976_s14 + $0x30] sm:$0xff] }
 0xb02   :  { %3720 = vmatprep.subr.mxu1 %v1581_v25 }
 0xb03   :  { %3721 = vmatpush3.msra.mxu1 %v1581_v25  ;;  %v3382_v25 = vld [vmem:[%s4976_s14 + $0x28] sm:$0xff] }
 0xb04   :  { %3722 = vmatprep.subr.mxu1 %v1580_v26 }
 0xb05   :  { %3723 = vmatpush3.msra.mxu1 %v1580_v26  ;;  %v3381_v26 = vld [vmem:[%s4976_s14 + $0x20] sm:$0xff] }
 0xb06   :  { %3724 = vmatprep.subr.mxu1 %v1579_v27 }
 0xb07   :  { %3725 = vmatpush3.msra.mxu1 %v1579_v27 }
 0xb08   :  { %3726 = vmatprep.subr.mxu1 %v1578_v28 }
 0xb09   :  { %3727 = vmatpush3.msra.mxu1 %v1578_v28 }
 0xb0a   :  { %3728 = vmatprep.subr.mxu1 %v1577_v29 }
 0xb0b   :  { %3729 = vmatpush3.msra.mxu1 %v1577_v29 }
 0xbb0   :  { %v3690_v30 = vpop.f32.mrf.mxu1 }
 0xbb1   :  { %v1409_v38 = vadd.f32 %v3690_v30, %v4330_v23  ;;  %v1576_v30 = vld [vmem:[%s4984_s22 + $0x8] sm:$0xff] }
 0xbb2   :  { %v1399_v31 = vpop.f32.mrf.mxu1  ;;  %3730 = vmatprep.subr.mxu1 %v1576_v30 }
 0xbb3   :  { %v4521_v32 = vadd.f32 %v3363_v39, %v1409_v38  ;;  %v1408_v33 = vadd.f32 %v1399_v31, %v4332_v24  ;;  %3731 = vmatpush3.msra.mxu1 %v1576_v30  ;;  %v349_v38 = vld [vmem:[%s5040_s29] sm:$0xff] }
 0xbb4   :  { %v351_v31 = vld [vmem:[%s5041_s5] sm:$0xff] }
 0xbb5   :  { %v4524_v34 = vadd.f32 %v3363_v39, %v1408_v33  ;;  %v1424_v35 = vsel %vm220_vm4, %v4521_v32, 0.0  ;;  %v1430_v40 = vmul.f32 %v4521_v32, %v4521_v32  ;;  %v1575_v39 = vld [vmem:[%s4984_s22] sm:$0xff]  ;;  %v4048_v33 = vmov 0  }
 0xbb6   :  { %1425 = vadd.xlane.f32.xlu1 %v1424_v35  ;;  %3732 = vmatprep.subr.mxu1 %v1575_v39  ;;  %v1850_v35 = vsub.f32 1.0, %v351_v31 }
 0xbb7   :  { %v1421_v36 = vsel %vm220_vm4, %v4524_v34, 0.0  ;;  %v1429_v37 = vmul.f32 %v4524_v34, %v4524_v34  ;;  %v1434_v24 = vsel %vm220_vm4, %v1430_v40, 0.0  ;;  %3733 = vmatpush3.msra.mxu1 %v1575_v39  ;;  %3903 = vset.pattern.permute.xlu1 %v4048_v33 }
 0xbb8   :  { %1422 = vadd.xlane.f32.xlu0 %v1421_v36  ;;  %v352_v36 = vld [vmem:[%s5041_s5 + $0x8] sm:$0xff] }
 0xbb9   :  { %v1431_v23 = vsel %vm220_vm4, %v1429_v37, 0.0  ;;  %3902 = vset.pattern.permute.xlu0 %v4048_v33  ;;  %v1851_v37 = vsub.f32 1.0, %v352_v36 }
 0xbbc   :  { %1432 = vadd.xlane.f32.xlu0 %v1431_v23  ;;  %v3366_v23 = vld [vmem:[%s4983_s21] ss:$0 sm:$0xff] }
 0xbc0   :  { %1435 = vadd.xlane.f32.xlu0 %v1434_v24 }
 0xbc7   :  { %1854 = vperm.xlu1 %3903, %v1850_v35  }
 0xbcb   :  { %1845 = vperm.xlu1 %3903, %v352_v36  }
 0xbcf   :  { %1859 = vperm.xlu1 %3903, %v1851_v37  }
 0xbd6   :  { %1840 = vperm.xlu0 %3902, %v351_v31  }
 0xc3f   :  { %v1426_v47 = vpop.xlane.xlu1 %1425 }
 0xc40   :  { %v1428_v49 = vmul.f32 0.03125, %v1426_v47 }
 0xc41   :  { %v1423_v45 = vpop.xlane.xlu0 %1422 }
 0xc42   :  { %v1427_v46 = vmul.f32 0.03125, %v1423_v45  ;;  %v1440_v54 = vmul.f32 %v1428_v49, %v1428_v49  ;;  %v1444_v62 = vsub.f32 %v4521_v32, %v1428_v49  ;;  %v350_v49 = vld [vmem:[%s5040_s29 + $0x8] sm:$0xff] }
 0xc44   :  { %v1439_v50 = vmul.f32 %v1427_v46, %v1427_v46  ;;  %v1443_v58 = vsub.f32 %v4524_v34, %v1427_v46 }
 0xc45   :  { %v1433_v48 = vpop.xlane.xlu0 %1432 }
 0xc46   :  { %v1437_v51 = vmul.f32 0.03125, %v1433_v48 }
 0xc48   :  { %v1441_v52 = vsub.f32 %v1437_v51, %v1439_v50 }
 0xc49   :  { %v1436_v53 = vpop.xlane.xlu0 %1435 }
 0xc4a   :  { %v1445_v55 = vadd.f32 1e-05, %v1441_v52  ;;  %v1438_v56 = vmul.f32 0.03125, %v1436_v53 }
 0xc4c   :  { %3944 = vrsqrt.f32 %v1445_v55  ;;  %v1442_v63 = vsub.f32 %v1438_v56, %v1440_v54 }
 0xc4e   :  { %v1446_v57 = vadd.f32 1e-05, %v1442_v63 }
 0xc50   :  { %3946 = vrsqrt.f32 %v1446_v57  ;;  %v1855_v57 = vpop.permute.xlu1 %1854 }
 0xc59   :  { %v3945_v2 = vpop.eup %3944 }
 0xc5a   :  { %v1449_v60 = vmul.f32 %v3945_v2, %v1443_v58  ;;  %v1846_v58 = vpop.permute.xlu1 %1845 }
 0xc5c   :  { %v1457_v0 = vmul.f32 %v3364_v59, %v1449_v60 }
 0xc5d   :  { %v3947_v3 = vpop.eup %3946 }
 0xc5e   :  { %v1450_v4 = vmul.f32 %v3947_v3, %v1444_v62  ;;  %v1465_v7 = vadd.f32 %v3365_v61, %v1457_v0  ;;  %v1860_v0 = vpop.permute.xlu1 %1859 }
 0xc60   :  { %v1458_v9 = vmul.f32 %v3364_v59, %v1450_v4  ;;  %3699 = vmatprep.mubr.msk.f32.mxu0 %vm220_vm4, %v1465_v7  ;;  %v3371_v59 = vld [vmem:[%s4985_s23] ss:$0 sm:$0xff] }
 0xc62   :  { %v1466_v10 = vadd.f32 %v3365_v61, %v1458_v9 }
 0xc64   :  { %3700 = vmatmul.mubr.msk.f32.vlgmr.msra.gmra.mxu0 %vm220_vm4, %v1466_v10  ;;  %v1841_v10 = vpop.permute.xlu0 %1840 }
 0xc65   :  { %3738 = vmatpush3.msra.mxu0 %v4006_v11  ;;  %3741 = vmatprep.mubr.msk.f32.mxu0 %vm4033_vm0, %v4032_v1 }
 0xc66   :  { %3739 = vmatprep.subr.mxu0 %v4032_v1 }
 0xc67   :  { %3740 = vmatpush3.msra.mxu0 %v4007_v13 }
 0xc68   :  { %3742 = vmatmul.mubr.msk.f32.vlgmr.msra.gmra.mxu0 %vm257_vm2, %v3372_v12 }
 0xc69   :  { %3746 = vmatprep.mubr.msk.f32.mxu0 %vm1752_vm11, %v349_v38 }
 0xd24   :  { %v3701_v40 = vpop.f32.mrf.mxu0 }
 0xd25   :  { %v1556_v24 = vadd.f32 %v3701_v40, %v3366_v23 }
 0xd26   :  { %v1550_v41 = vpop.f32.mrf.mxu0 }
 0xd27   :  { %v3370_v42 = vmul.f32 -1.702, %v1556_v24  ;;  %v1551_v43 = vadd.f32 %v3366_v23, %v1550_v41 }
 0xd28   :  { %v1748_v44 = vpop.f32.mrf.mxu0 }
 0xd29   :  { %v1565_v45 = vmul.f32 1.442695, %v3370_v42  ;;  %v3369_v46 = vmul.f32 -1.702, %v1551_v43  ;;  %v1749_v47 = vadd.f32 %v4326_v6, %v1748_v44 }
 0xd2a   :  { %v3743_v48 = vpop.f32.mrf.mxu0 }
 0xd2b   :  { %3948 = vpow2.f32 %v1565_v45  ;;  %v1563_v50 = vmul.f32 1.442695, %v3369_v46  ;;  %3744 = vmatprep.subr.msk.mxu0 %vm1759_vm12, %v1749_v47  ;;  %v3380_v45 = vld [vmem:[%s4975_s13 + $0x1] ss:$0 sm:$0xff] }
 0xd2c   :  { %3745 = vmatpush3.msk.msra.mxu0 %vm1759_vm12, %v1749_v47 }
 0xd2d   :  { %3950 = vpow2.f32 %v1563_v50  ;;  %3747 = vmatmul.mubr.msk.f32.vlgmr.msra.gmra.mxu0 %vm1752_vm11, %v350_v49  ;;  %3749 = vmatprep.subr.mxu0 %v3384_v21 }
 0xd2e   :  { %3750 = vmatpush3.msra.mxu0 %v3384_v21 }
 0xd2f   :  { %3751 = vmatprep.subr.mxu0 %v3383_v22 }
 0xd30   :  { %3752 = vmatpush3.msra.mxu0 %v3383_v22 }
 0xd31   :  { %3753 = vmatprep.subr.mxu0 %v3382_v25 }
 0xd32   :  { %3754 = vmatpush3.msra.mxu0 %v3382_v25 }
 0xd33   :  { %3755 = vmatprep.subr.mxu0 %v3381_v26 }
 0xd34   :  { %3756 = vmatpush3.msra.mxu0 %v3381_v26 }
 0xd38   :  { %v3949_v51 = vpop.eup %3948 }
 0xd39   :  { %v1568_v52 = vadd.f32 1.0, %v3949_v51 }
 0xd3a   :  { %v3951_v53 = vpop.eup %3950 }
 0xd3b   :  { %v1567_v54 = vadd.f32 1.0, %v3951_v53  ;;  %3952 = vrcp.f32 %v1568_v52  ;;  %v3386_v53 = vld [vmem:[%s4977_s15 + $0x1] ss:$0 sm:$0xff]  ;;  %s5051_s15 = smov 24  }
 0xd3d   :  { %3954 = vrcp.f32 %v1567_v54 }
 0xd48   :  { %v3953_v55 = vpop.eup %3952 }
 0xd49   :  { %v1574_v63 = vmul.f32 %v3953_v55, %v1556_v24 }
 0xd4a   :  { %v3955_v6 = vpop.eup %3954 }
 0xd4b   :  { %v1573_v56 = vmul.f32 %v3955_v6, %v1551_v43  ;;  %v3379_v43 = vld [vmem:[%s4974_s12 + $0x1] ss:$0 sm:$0xff] }
 0xd4d   :  { %3734 = vmatprep.mubr.f32.mxu1 %v1573_v56 }
 0xd4e   :  { %3735 = vmatmul.mubr.f32.vlgmr.msra.gmra.mxu1 %v1574_v63 }
 0xded   :  { %v3748_v60 = vpop.f32.mrf.mxu0 }
 0xdee   :  { %v1849_v4 = vmul.f32 %v3748_v60, %v1846_v58 }
 0xdef   :  { %v1829_v9 = vpop.f32.mrf.mxu0 }
 0xdf0   :  { %v1848_v15 = vmul.f32 %v1841_v10, %v1829_v9 }
 0xe0e   :  { %v3736_v2 = vpop.f32.mrf.mxu1 }
 0xe0f   :  { %v1667_v61 = vadd.f32 %v3736_v2, %v4521_v32 }
 0xe10   :  { %v1657_v62 = vpop.f32.mrf.mxu1 }
 0xe11   :  { %v1666_v3 = vadd.f32 %v1657_v62, %v4524_v34  ;;  %v1676_v7 = vadd.f32 %v3371_v59, %v1667_v61 }
 0xe13   :  { %v1675_v11 = vadd.f32 %v3371_v59, %v1666_v3  ;;  %v1863_v12 = vmul.f32 %v1860_v0, %v1676_v7 }
 0xe15   :  { %v4643_v13 = vadd.f32 %v1863_v12, %v1849_v4  ;;  %v1862_v14 = vmul.f32 %v1855_v57, %v1675_v11 }
 0xe17   :  { %v4645_v16 = vadd.f32 %v1862_v14, %v1848_v15  ;;  %v1873_v17 = vsel %vm220_vm4, %v4643_v13, 0.0  ;;  %v1879_v19 = vmul.f32 %v4643_v13, %v4643_v13 }
 0xe18   :  { %1874 = vadd.xlane.f32.xlu0 %v1873_v17 }
 0xe19   :  { %v1870_v32 = vsel %vm220_vm4, %v4645_v16, 0.0  ;;  %v1878_v34 = vmul.f32 %v4645_v16, %v4645_v16  ;;  %v1883_v20 = vsel %vm220_vm4, %v1879_v19, 0.0 }
 0xe1a   :  { %1871 = vadd.xlane.f32.xlu1 %v1870_v32 }
 0xe1b   :  { %v1880_v18 = vsel %vm220_vm4, %v1878_v34, 0.0 }
 0xe1e   :  { %1881 = vadd.xlane.f32.xlu1 %v1880_v18 }
 0xe22   :  { %1884 = vadd.xlane.f32.xlu1 %v1883_v20 }
 0xea1   :  { %v1875_v29 = vpop.xlane.xlu0 %1874 }
 0xea2   :  { %v1877_v39 = vmul.f32 0.03125, %v1875_v29 }
 0xea3   :  { %v1872_v27 = vpop.xlane.xlu1 %1871 }
 0xea4   :  { %v1876_v28 = vmul.f32 0.03125, %v1872_v27  ;;  %v1889_v36 = vmul.f32 %v1877_v39, %v1877_v39  ;;  %v1893_v46 = vsub.f32 %v4643_v13, %v1877_v39 }
 0xea6   :  { %v1888_v38 = vmul.f32 %v1876_v28, %v1876_v28  ;;  %v1892_v41 = vsub.f32 %v4645_v16, %v1876_v28 }
 0xea7   :  { %v1882_v30 = vpop.xlane.xlu1 %1881 }
 0xea8   :  { %v1886_v31 = vmul.f32 0.03125, %v1882_v30  ;;  %v4731_v30 = vld [vmem:[%s5039_s2 + $0x8] sm:$0xff] }
 0xeaa   :  { %v1890_v33 = vsub.f32 %v1886_v31, %v1888_v38  ;;  %v4737_v31 = vld [vmem:[%s5039_s2] sm:$0xff]  ;;  %s5042_s2 = smov 56  }
 0xeab   :  { %v1885_v35 = vpop.xlane.xlu1 %1884 }
 0xeac   :  { %v1894_v37 = vadd.f32 1e-05, %v1890_v33  ;;  %v1887_v23 = vmul.f32 0.03125, %v1885_v35 }
 0xeae   :  { %3956 = vrsqrt.f32 %v1894_v37  ;;  %v1891_v40 = vsub.f32 %v1887_v23, %v1889_v36 }
 0xeb0   :  { %v1895_v24 = vadd.f32 1e-05, %v1891_v40 }
 0xeb2   :  { %3958 = vrsqrt.f32 %v1895_v24 }
 0xebb   :  { %v3957_v42 = vpop.eup %3956 }
 0xebc   :  { %v1898_v44 = vmul.f32 %v3957_v42, %v1892_v41 }
 0xebe   :  { %v1906_v47 = vmul.f32 %v3379_v43, %v1898_v44 }
 0xebf   :  { %v3959_v48 = vpop.eup %3958 }
 0xec0   :  { %v1899_v49 = vmul.f32 %v3959_v48, %v1893_v46  ;;  %v1914_v50 = vadd.f32 %v3380_v45, %v1906_v47 }
 0xec2   :  { %v1907_v51 = vmul.f32 %v3379_v43, %v1899_v49  ;;  %3757 = vmatprep.mubr.msk.f32.mxu0 %vm220_vm4, %v1914_v50 }
 0xec4   :  { %v1915_v52 = vadd.f32 %v3380_v45, %v1907_v51 }
 0xec6   :  { %3758 = vmatmul.mubr.msk.f32.vlgmr.msra.gmra.mxu0 %vm220_vm4, %v1915_v52 }
 0xf86   :  { %v3759_v54 = vpop.f32.mrf.mxu0 }
 0xf87   :  { %v4682_v55 = vadd.f32 %v3759_v54, %v3386_v53 }
 0xf88   :  { %v2001_v6 = vpop.f32.mrf.mxu0 }
 0xf89   :  { %v4684_v56 = vadd.f32 %v3386_v53, %v2001_v6  ;;  %2014 = vrot.lane.b32.xlu1 %v4682_v55, %s4034_s10 }
 0xf8b   :  { %2012 = vrot.lane.b32.xlu0 %v4684_v56, %s4034_s10  ;;  %3764 = vmatprep.mubr.msk.f32.mxu0 %vm499_vm9, %v4684_v56 }
 0xffb   :  { %v2015_v63 = vpop.permute.xlu1 %2014 }
 0xffc   :  { %3760 = vmatprep.subr.msk.mxu0 %vm499_vm9, %v2015_v63 }
 0xffd   :  { %3761 = vmatpush3.xpose.msk.msra.mxu0 %vm499_vm9, %v2015_v63  ;;  %v2013_v57 = vpop.permute.xlu0 %2012 }
 0xffe   :  { %3762 = vmatprep.subr.msk.mxu0 %vm499_vm9, %v2013_v57 }
0x1001   :  { %3763 = vmatpush3.xpose.msk.msra.mxu0 %vm499_vm9, %v2013_v57 }
0x1004   :  { %3765 = vmatmul.mubr.msk.f32.vlgmr.msra.gmra.mxu0 %vm499_vm9, %v4682_v55 }
0x10c4   :  { %v3766_v58 = vpop.f32.mrf.mxu0 }
0x10c5   :  { %v2096_v2 = vadd.f32 %v3766_v58, %v4388_v5 }
0x10c6   :  { %v2090_v59 = vpop.f32.mrf.mxu0 }
0x10c7   :  { %v2091_v60 = vadd.f32 %v2090_v59, %v4393_v8  ;;  %v2102_v61 = vsel %vm257_vm2, %v2096_v2, -inf }
0x10c8   :  { %2103 = vmax.xlane.f32.xlu0 %v2102_v61 }
0x10c9   :  { %v2099_v62 = vsel %vm257_vm2, %v2091_v60, -inf }
0x10ca   :  { %2100 = vmax.xlane.f32.xlu1 %v2099_v62 }
0x10db   :  { %2121 = vrot.lane.b32.xlu1 %v4684_v56, %s4035_s3 }
0x10de   :  { %2123 = vrot.lane.b32.xlu0 %v4682_v55, %s4035_s3  ;;  %s5043_s3 = smov 80  }
0x10df   :  { %2214 = vrot.lane.b32.xlu1 %v4682_v55, %s4036_s7 }
0x10e2   :  { %2212 = vrot.lane.b32.xlu0 %v4684_v56, %s4036_s7  ;;  %s5044_s7 = smov 112  }
0x10e6   :  { %2210 = vrot.lane.b32.xlu0 %v4682_v55, %s4037_s30 }
0x1151   :  { %v2104_v5 = vpop.xlane.xlu0 %2103 }
0x1152   :  { %v2106_v8 = vsub.f32 %v2096_v2, %v2104_v5 }
0x1153   :  { %v2101_v0 = vpop.xlane.xlu1 %2100 }
0x1154   :  { %v2109_v3 = vmul.f32 1.442695, %v2106_v8  ;;  %v2105_v4 = vsub.f32 %v2091_v60, %v2101_v0 }
0x1155   :  { %v2124_v7 = vpop.permute.xlu0 %2123 }
0x1156   :  { %3960 = vpow2.f32 %v2109_v3  ;;  %v2107_v9 = vmul.f32 1.442695, %v2105_v4  ;;  %3767 = vmatprep.subr.mxu0 %v2124_v7 }
0x1157   :  { %3768 = vmatpush3.msra.mxu0 %v2124_v7  ;;  %v2122_v10 = vpop.permute.xlu1 %2121 }
0x1158   :  { %3962 = vpow2.f32 %v2107_v9  ;;  %3769 = vmatprep.subr.mxu0 %v2122_v10 }
0x1159   :  { %3770 = vmatpush3.msra.mxu0 %v2122_v10  ;;  %v2213_v25 = vpop.permute.xlu0 %2212 }
0x115b   :  { %v2215_v11 = vpop.permute.xlu1 %2214 }
0x115c   :  { %3774 = vmatprep.subr.msk.mxu0 %vm499_vm9, %v2215_v11 }
0x115d   :  { %v2211_v26 = vpop.permute.xlu0 %2210 }
0x1163   :  { %v3961_v12 = vpop.eup %3960 }
0x1164   :  { %v2114_v14 = vsel %vm257_vm2, %v3961_v12, 0.0 }
0x1165   :  { %v3963_v15 = vpop.eup %3962  ;;  %2115 = vadd.xlane.f32.xlu1 %v2114_v14 }
0x1166   :  { %v2111_v17 = vsel %vm257_vm2, %v3963_v15, 0.0 }
0x1169   :  { %2112 = vadd.xlane.f32.xlu1 %v2111_v17 }
0x117a   :  { %2208 = vrot.lane.b32.xlu1 %v4684_v56, %s4037_s30  ;;  %s5045_s30 = smov 48  }
0x11ee   :  { %v2116_v32 = vpop.xlane.xlu1 %2115 }
0x11ef   :  { %3964 = vrcp.f32 %v2116_v32 }
0x11f2   :  { %v2113_v34 = vpop.xlane.xlu1 %2112 }
0x11f3   :  { %3966 = vrcp.f32 %v2113_v34 }
0x11f6   :  { %v2209_v22 = vpop.permute.xlu1 %2208 }
0x11fc   :  { %v3965_v18 = vpop.eup %3964 }
0x11fd   :  { %v2120_v21 = vmul.f32 %v3965_v18, %v3961_v12 }
0x1200   :  { %v3967_v19 = vpop.eup %3966 }
0x1201   :  { %v2118_v20 = vmul.f32 %v3967_v19, %v3963_v15 }
0x1203   :  { %3771 = vmatprep.mubr.msk.f32.mxu0 %vm257_vm2, %v2118_v20 }
0x1204   :  { %3772 = vmatmul.mubr.msk.f32.vlgmr.msra.gmra.mxu0 %vm257_vm2, %v2120_v21 }
0x1205   :  { %3775 = vmatpush3.xpose.msk.msra.mxu0 %vm499_vm9, %v2215_v11  ;;  %3778 = vmatprep.mubr.msk.f32.mxu0 %vm499_vm9, %v2209_v22 }
0x1206   :  { %3776 = vmatprep.subr.msk.mxu0 %vm499_vm9, %v2213_v25 }
0x1209   :  { %3777 = vmatpush3.xpose.msk.msra.mxu0 %vm499_vm9, %v2213_v25 }
0x120c   :  { %3779 = vmatmul.mubr.msk.f32.vlgmr.msra.gmra.mxu0 %vm499_vm9, %v2211_v26 }
0x12c4   :  { %v4724_v27 = vpop.f32.mrf.mxu0 }
0x12c6   :  { %v4726_v28 = vpop.f32.mrf.mxu0 }
0x12cc   :  { %v3780_v29 = vpop.f32.mrf.mxu0 }
0x12cd   :  { %v2296_v39 = vadd.f32 %v4731_v30, %v3780_v29 }
0x12ce   :  { %v2290_v38 = vpop.f32.mrf.mxu0 }
0x12cf   :  { %v2291_v33 = vadd.f32 %v4737_v31, %v2290_v38  ;;  %v2302_v35 = vsel %vm257_vm2, %v2296_v39, -inf }
0x12d0   :  { %2303 = vmax.xlane.f32.xlu0 %v2302_v35 }
0x12d1   :  { %v2299_v36 = vsel %vm257_vm2, %v2291_v33, -inf }
0x12d2   :  { %2300 = vmax.xlane.f32.xlu1 %v2299_v36 }
0x1359   :  { %v2304_v37 = vpop.xlane.xlu0 %2303 }
0x135a   :  { %v2306_v23 = vsub.f32 %v2296_v39, %v2304_v37 }
0x135b   :  { %v2301_v40 = vpop.xlane.xlu1 %2300 }
0x135c   :  { %v2309_v24 = vmul.f32 1.442695, %v2306_v23  ;;  %v2305_v41 = vsub.f32 %v2291_v33, %v2301_v40 }
0x135e   :  { %3968 = vpow2.f32 %v2309_v24  ;;  %v2307_v42 = vmul.f32 1.442695, %v2305_v41 }
0x1360   :  { %3970 = vpow2.f32 %v2307_v42 }
0x136b   :  { %v3969_v43 = vpop.eup %3968 }
0x136c   :  { %v2314_v44 = vsel %vm257_vm2, %v3969_v43, 0.0 }
0x136d   :  { %v3971_v45 = vpop.eup %3970  ;;  %2315 = vadd.xlane.f32.xlu1 %v2314_v44 }
0x136e   :  { %v2311_v46 = vsel %vm257_vm2, %v3971_v45, 0.0 }
0x136f   :  { %2312 = vadd.xlane.f32.xlu0 %v2311_v46 }
0x137e   :  { %2321 = vrot.lane.b32.xlu1 %v4684_v56, %s5042_s2 }
0x1382   :  { %2414 = vrot.lane.b32.xlu1 %v4682_v55, %s5043_s3 }
0x1385   :  { %2323 = vrot.lane.b32.xlu0 %v4682_v55, %s5042_s2 }
0x1386   :  { %2408 = vrot.lane.b32.xlu1 %v4684_v56, %s5044_s7 }
0x1389   :  { %2412 = vrot.lane.b32.xlu0 %v4684_v56, %s5043_s3 }
0x138d   :  { %2410 = vrot.lane.b32.xlu0 %v4682_v55, %s5044_s7 }
0x13f6   :  { %v2316_v47 = vpop.xlane.xlu1 %2315 }
0x13f7   :  { %3972 = vrcp.f32 %v2316_v47 }
0x13f8   :  { %v2313_v48 = vpop.xlane.xlu0 %2312 }
0x13f9   :  { %3974 = vrcp.f32 %v2313_v48 }
0x13fa   :  { %v2322_v49 = vpop.permute.xlu1 %2321 }
0x13fc   :  { %v2324_v50 = vpop.permute.xlu0 %2323 }
0x13fd   :  { %3781 = vmatprep.subr.mxu1 %v2324_v50 }
0x13fe   :  { %3782 = vmatpush3.msra.mxu1 %v2324_v50  ;;  %v2415_v51 = vpop.permute.xlu1 %2414 }
0x13ff   :  { %3783 = vmatprep.subr.mxu1 %v2322_v49 }
0x1400   :  { %3784 = vmatpush3.msra.mxu1 %v2322_v49  ;;  %v2413_v57 = vpop.permute.xlu0 %2412 }
0x1401   :  { %3788 = vmatprep.subr.msk.mxu1 %vm499_vm9, %v2415_v51 }
0x1402   :  { %v2409_v63 = vpop.permute.xlu1 %2408 }
0x1404   :  { %v3973_v52 = vpop.eup %3972  ;;  %v2411_v58 = vpop.permute.xlu0 %2410 }
0x1405   :  { %v2320_v6 = vmul.f32 %v3973_v52, %v3969_v43 }
0x1406   :  { %v3975_v53 = vpop.eup %3974 }
0x1407   :  { %v2318_v54 = vmul.f32 %v3975_v53, %v3971_v45 }
0x1409   :  { %3785 = vmatprep.mubr.msk.f32.mxu1 %vm257_vm2, %v2318_v54 }
0x140a   :  { %3786 = vmatmul.mubr.msk.f32.vlgmr.msra.gmra.mxu1 %vm257_vm2, %v2320_v6 }
0x140b   :  { %3789 = vmatpush3.xpose.msk.msra.mxu1 %vm499_vm9, %v2415_v51  ;;  %3792 = vmatprep.mubr.msk.f32.mxu1 %vm499_vm9, %v2409_v63  ;;  %v3416_v63 = vld [vmem:[%s4978_s16 + $0x38] sm:$0xff] }
0x140c   :  { %3790 = vmatprep.subr.msk.mxu1 %vm499_vm9, %v2413_v57 }
0x140f   :  { %3791 = vmatpush3.xpose.msk.msra.mxu1 %vm499_vm9, %v2413_v57  ;;  %v3415_v57 = vld [vmem:[%s4978_s16 + $0x30] sm:$0xff] }
0x1412   :  { %3793 = vmatmul.mubr.msk.f32.vlgmr.msra.gmra.mxu1 %vm499_vm9, %v2411_v58  ;;  %v3414_v58 = vld [vmem:[%s4978_s16 + $0x28] sm:$0xff] }
0x14ca   :  { %v4764_v2 = vpop.f32.mrf.mxu1 }
0x14cc   :  { %v4766_v59 = vpop.f32.mrf.mxu1 }
0x14d2   :  { %v3794_v60 = vpop.f32.mrf.mxu1 }
0x14d3   :  { %v2496_v61 = vadd.f32 %v4731_v30, %v3794_v60 }
0x14d4   :  { %v2490_v62 = vpop.f32.mrf.mxu1 }
0x14d5   :  { %v2491_v5 = vadd.f32 %v4737_v31, %v2490_v62  ;;  %v2502_v8 = vsel %vm257_vm2, %v2496_v61, -inf }
0x14d6   :  { %2503 = vmax.xlane.f32.xlu0 %v2502_v8 }
0x14d7   :  { %v2499_v0 = vsel %vm257_vm2, %v2491_v5, -inf }
0x14d8   :  { %2500 = vmax.xlane.f32.xlu1 %v2499_v0 }
0x155f   :  { %v2504_v3 = vpop.xlane.xlu0 %2503 }
0x1560   :  { %v2506_v4 = vsub.f32 %v2496_v61, %v2504_v3 }
0x1561   :  { %v2501_v7 = vpop.xlane.xlu1 %2500 }
0x1562   :  { %v2509_v9 = vmul.f32 1.442695, %v2506_v4  ;;  %v2505_v10 = vsub.f32 %v2491_v5, %v2501_v7 }
0x1564   :  { %3976 = vpow2.f32 %v2509_v9  ;;  %v2507_v11 = vmul.f32 1.442695, %v2505_v10 }
0x1566   :  { %3978 = vpow2.f32 %v2507_v11 }
0x1571   :  { %v3977_v12 = vpop.eup %3976 }
0x1572   :  { %v2514_v14 = vsel %vm257_vm2, %v3977_v12, 0.0 }
0x1573   :  { %v3979_v15 = vpop.eup %3978  ;;  %2515 = vadd.xlane.f32.xlu1 %v2514_v14 }
0x1574   :  { %v2511_v17 = vsel %vm257_vm2, %v3979_v15, 0.0 }
0x1575   :  { %2512 = vadd.xlane.f32.xlu0 %v2511_v17 }
0x1584   :  { %2521 = vrot.lane.b32.xlu1 %v4684_v56, %s5045_s30 }
0x1588   :  { %2614 = vrot.lane.b32.xlu1 %v4682_v55, %s5046_s0 }
0x158b   :  { %2523 = vrot.lane.b32.xlu0 %v4682_v55, %s5045_s30 }
0x158c   :  { %2608 = vrot.lane.b32.xlu1 %v4684_v56, %s5047_s28 }
0x158f   :  { %2612 = vrot.lane.b32.xlu0 %v4684_v56, %s5046_s0 }
0x1593   :  { %2610 = vrot.lane.b32.xlu0 %v4682_v55, %s5047_s28 }
0x15fc   :  { %v2516_v32 = vpop.xlane.xlu1 %2515 }
0x15fd   :  { %3980 = vrcp.f32 %v2516_v32 }
0x15fe   :  { %v2513_v34 = vpop.xlane.xlu0 %2512 }
0x15ff   :  { %3982 = vrcp.f32 %v2513_v34 }
0x1600   :  { %v2522_v18 = vpop.permute.xlu1 %2521 }
0x1602   :  { %v2524_v19 = vpop.permute.xlu0 %2523 }
0x1603   :  { %3795 = vmatprep.subr.mxu0 %v2524_v19 }
0x1604   :  { %3796 = vmatpush3.msra.mxu0 %v2524_v19  ;;  %v2615_v20 = vpop.permute.xlu1 %2614 }
0x1605   :  { %3797 = vmatprep.subr.mxu0 %v2522_v18 }
0x1606   :  { %3798 = vmatpush3.msra.mxu0 %v2522_v18  ;;  %v2613_v39 = vpop.permute.xlu0 %2612 }
0x1607   :  { %3802 = vmatprep.subr.msk.mxu0 %vm499_vm9, %v2615_v20 }
0x1608   :  { %v2609_v29 = vpop.permute.xlu1 %2608 }
0x160a   :  { %v3981_v21 = vpop.eup %3980  ;;  %v2611_v38 = vpop.permute.xlu0 %2610 }
0x160b   :  { %v2520_v26 = vmul.f32 %v3981_v21, %v3977_v12 }
0x160c   :  { %v3983_v22 = vpop.eup %3982 }
0x160d   :  { %v2518_v25 = vmul.f32 %v3983_v22, %v3979_v15  ;;  %v3428_v22 = vld [vmem:[%s4982_s20 + $0x38] sm:$0xff] }
0x160f   :  { %3799 = vmatprep.mubr.msk.f32.mxu0 %vm257_vm2, %v2518_v25  ;;  %v3427_v25 = vld [vmem:[%s4982_s20 + $0x30] sm:$0xff] }
0x1610   :  { %3800 = vmatmul.mubr.msk.f32.vlgmr.msra.gmra.mxu0 %vm257_vm2, %v2520_v26  ;;  %v3426_v26 = vld [vmem:[%s4982_s20 + $0x28] sm:$0xff] }
0x1611   :  { %3803 = vmatpush3.xpose.msk.msra.mxu0 %vm499_vm9, %v2615_v20  ;;  %3806 = vmatprep.mubr.msk.f32.mxu0 %vm499_vm9, %v2609_v29  ;;  %v3425_v29 = vld [vmem:[%s4982_s20 + $0x20] sm:$0xff]  ;;  %s4049_s20 = smov [#allocation2]  }
0x1612   :  { %3804 = vmatprep.subr.msk.mxu0 %vm499_vm9, %v2613_v39 }
0x1615   :  { %3805 = vmatpush3.xpose.msk.msra.mxu0 %vm499_vm9, %v2613_v39 }
0x1616   :  { %3827 = vmatprep.subr.mxu0 %v3428_v22 }
0x1618   :  { %3807 = vmatmul.mubr.msk.f32.vlgmr.msra.gmra.mxu0 %vm499_vm9, %v2611_v38 }
0x1619   :  { %3828 = vmatpush3.msra.mxu0 %v3428_v22 }
0x161a   :  { %3829 = vmatprep.subr.mxu0 %v3427_v25 }
0x161b   :  { %3830 = vmatpush3.msra.mxu0 %v3427_v25 }
0x161c   :  { %3831 = vmatprep.subr.mxu0 %v3426_v26 }
0x161d   :  { %3832 = vmatpush3.msra.mxu0 %v3426_v26 }
0x161e   :  { %3833 = vmatprep.subr.mxu0 %v3425_v29 }
0x161f   :  { %3834 = vmatpush3.msra.mxu0 %v3425_v29  ;;  %v3452_v29 = vld [vmem:[%s4985_s23 + $0x1] ss:$0 sm:$0xff] }
0x1620   :  { %3873 = vmatprep.subr.mxu0 %v4032_v1 }
0x16d0   :  { %v3801_v33 = vpop.f32.mrf.mxu0 }
0x16d2   :  { %v2599_v35 = vpop.f32.mrf.mxu0 }
0x16d8   :  { %v3808_v36 = vpop.f32.mrf.mxu0 }
0x16d9   :  { %v2696_v37 = vadd.f32 %v4731_v30, %v3808_v36 }
0x16da   :  { %v2690_v23 = vpop.f32.mrf.mxu0 }
0x16db   :  { %v2691_v40 = vadd.f32 %v4737_v31, %v2690_v23  ;;  %v2702_v24 = vsel %vm257_vm2, %v2696_v37, -inf }
0x16dc   :  { %2703 = vmax.xlane.f32.xlu0 %v2702_v24 }
0x16dd   :  { %v2699_v41 = vsel %vm257_vm2, %v2691_v40, -inf }
0x16de   :  { %2700 = vmax.xlane.f32.xlu1 %v2699_v41 }
0x1765   :  { %v2704_v42 = vpop.xlane.xlu0 %2703 }
0x1766   :  { %v2706_v43 = vsub.f32 %v2696_v37, %v2704_v42 }
0x1767   :  { %v2701_v44 = vpop.xlane.xlu1 %2700 }
0x1768   :  { %v2709_v45 = vmul.f32 1.442695, %v2706_v43  ;;  %v2705_v46 = vsub.f32 %v2691_v40, %v2701_v44 }
0x176a   :  { %3984 = vpow2.f32 %v2709_v45  ;;  %v2707_v47 = vmul.f32 1.442695, %v2705_v46 }
0x176c   :  { %3986 = vpow2.f32 %v2707_v47 }
0x1777   :  { %v3985_v48 = vpop.eup %3984 }
0x1778   :  { %v2714_v30 = vsel %vm257_vm2, %v3985_v48, 0.0 }
0x1779   :  { %v3987_v49 = vpop.eup %3986  ;;  %2715 = vadd.xlane.f32.xlu1 %v2714_v30 }
0x177a   :  { %v2711_v31 = vsel %vm257_vm2, %v3987_v49, 0.0 }
0x177b   :  { %2712 = vadd.xlane.f32.xlu0 %v2711_v31 }
0x178a   :  { %2721 = vrot.lane.b32.xlu1 %v4684_v56, %s5048_s8 }
0x178e   :  { %2810 = vrot.lane.b32.xlu1 %v4766_v59, %s5049_s1 }
0x1791   :  { %2723 = vrot.lane.b32.xlu0 %v4682_v55, %s5048_s8 }
0x1792   :  { %2818 = vrot.lane.b32.xlu1 %v2599_v35, %s5050_s11 }
0x1795   :  { %2812 = vrot.lane.b32.xlu0 %v4764_v2, %s5049_s1  ;;  %v3413_v2 = vld [vmem:[%s4978_s16 + $0x20] sm:$0xff]  ;;  %s3321_s1 = sshll.u32 %s4049_s20, 4  ;;  %s3322_s1 = int_to_ptr.vmem [resolvable:$true] %s3321_s1 }
0x1796   :  { %p4015_p1 = scmp.lt.s32.totalorder %s3322_s1, %s3322_s1 }
0x1799   :  { %2820 = vrot.lane.b32.xlu0 %v3801_v33, %s5050_s11  ;;  %s4010_s11 = scalar_lea.vmem %s3322_s1, 32 }
0x179a   :  { %p4011_p0 = scmp.ne.s32.totalorder %s3322_s1, %s4010_s11  ;;  %p4016_p2 = scmp.lt.s32.totalorder %s4010_s11, %s4010_s11 }
0x179c   :  { %p4017_p3 = por %p4016_p2, %p4015_p1 }
0x179e   :  { %p4018_p4 = pnand %p4017_p3, %p4011_p0 }
0x1802   :  { %v2716_v50 = vpop.xlane.xlu1 %2715 }
0x1803   :  { %3988 = vrcp.f32 %v2716_v50  ;;  %v3424_v50 = vld [vmem:[%s4981_s19 + $0x1] ss:$0 sm:$0xff] }
0x1804   :  { %v2713_v51 = vpop.xlane.xlu0 %2712 }
0x1805   :  { %3990 = vrcp.f32 %v2713_v51 }
0x1806   :  { %v2722_v56 = vpop.permute.xlu1 %2721 }
0x1808   :  { %v2724_v52 = vpop.permute.xlu0 %2723 }
0x1809   :  { %3809 = vmatprep.subr.mxu1 %v2724_v52 }
0x180a   :  { %3810 = vmatpush3.msra.mxu1 %v2724_v52  ;;  %v2811_v62 = vpop.permute.xlu1 %2810 }
0x180b   :  { %3811 = vmatprep.subr.mxu1 %v2722_v56  ;;  %v2832_v0 = vsel %vm499_vm9, %v4726_v28, %v2811_v62  ;;  %v3420_v28 = vld [vmem:[%s4979_s17 + $0x1] ss:$0 sm:$0xff]  ;;  %v3441_v62 = vld [vmem:[%s4984_s22 + $0xb0] sm:$0xff] }
0x180c   :  { %3812 = vmatpush3.msra.mxu1 %v2722_v56  ;;  %v2813_v61 = vpop.permute.xlu0 %2812 }
0x180d   :  { %3816 = vmatprep.subr.mxu1 %v3416_v63  ;;  %v2833_v4 = vsel %vm499_vm9, %v4724_v27, %v2813_v61  ;;  %v3442_v61 = vld [vmem:[%s4984_s22 + $0xb8] sm:$0xff] }
0x180e   :  { %v2819_v8 = vpop.permute.xlu1 %2818 }
0x180f   :  { %v2834_v7 = vsel %vm257_vm2, %v2832_v0, %v2819_v8  ;;  %v3439_v8 = vld [vmem:[%s4984_s22 + $0xa0] sm:$0xff]  ;;  %v3438_v0 = vld [vmem:[%s4984_s22 + $0x98] sm:$0xff] }
0x1810   :  { %v3989_v53 = vpop.eup %3988  ;;  %v2821_v5 = vpop.permute.xlu0 %2820 }
0x1811   :  { %v2720_v6 = vmul.f32 %v3989_v53, %v3985_v48  ;;  %v2835_v10 = vsel %vm257_vm2, %v2833_v4, %v2821_v5  ;;  %v3423_v48 = vld [vmem:[%s4980_s18 + $0x1] ss:$0 sm:$0xff]  ;;  %v3440_v5 = vld [vmem:[%s4984_s22 + $0xa8] sm:$0xff] }
0x1812   :  { %v3991_v54 = vpop.eup %3990  ;;  %v3436_v4 = vld [vmem:[%s4984_s22 + $0x88] sm:$0xff] }
0x1813   :  { %v2718_v55 = vmul.f32 %v3991_v54, %v3987_v49 }
0x1815   :  { %3813 = vmatprep.mubr.msk.f32.mxu1 %vm257_vm2, %v2718_v55  ;;  %v3450_v55 = vld [vmem:[%s4984_s22 + $0xf8] sm:$0xff] }
0x1816   :  { %3814 = vmatmul.mubr.msk.f32.vlgmr.msra.gmra.mxu1 %vm257_vm2, %v2720_v6  ;;  %v3449_v6 = vld [vmem:[%s4984_s22 + $0xf0] sm:$0xff] }
0x1817   :  { %3817 = vmatpush3.msra.mxu1 %v3416_v63  ;;  %v3448_v63 = vld [vmem:[%s4984_s22 + $0xe8] sm:$0xff] }
0x1818   :  { %3818 = vmatprep.subr.mxu1 %v3415_v57 }
0x1819   :  { %3819 = vmatpush3.msra.mxu1 %v3415_v57  ;;  %v3447_v57 = vld [vmem:[%s4984_s22 + $0xe0] sm:$0xff] }
0x181a   :  { %3820 = vmatprep.subr.mxu1 %v3414_v58 }
0x181b   :  { %3821 = vmatpush3.msra.mxu1 %v3414_v58  ;;  %v3446_v58 = vld [vmem:[%s4984_s22 + $0xd8] sm:$0xff] }
0x181c   :  { %3822 = vmatprep.subr.mxu1 %v3413_v2 }
0x181d   :  { %3823 = vmatpush3.msra.mxu1 %v3413_v2  ;;  %v3445_v2 = vld [vmem:[%s4984_s22 + $0xd0] sm:$0xff] }
0x181e   :  { %3838 = vmatprep.subr.mxu1 %v3450_v55 }
0x18d6   :  { %v3815_v59 = vpop.f32.mrf.mxu1 }
0x18d7   :  { %2828 = vrot.lane.b32.xlu0 %v3815_v59, %s5051_s15  ;;  %v3444_v59 = vld [vmem:[%s4984_s22 + $0xc8] sm:$0xff] }
0x18d8   :  { %v2799_v60 = vpop.f32.mrf.mxu1 }
0x18d9   :  { %2826 = vrot.lane.b32.xlu1 %v2799_v60, %s5051_s15  ;;  %v3443_v60 = vld [vmem:[%s4984_s22 + $0xc0] sm:$0xff] }
0x1949   :  { %v2829_v3 = vpop.permute.xlu0 %2828 }
0x194a   :  { %v2837_v12 = vsel %vm1320_vm10, %v2835_v10, %v2829_v3  ;;  %v3437_v3 = vld [vmem:[%s4984_s22 + $0x90] sm:$0xff] }
0x194b   :  { %v2827_v9 = vpop.permute.xlu1 %2826 }
0x194c   :  { %v2836_v11 = vsel %vm1320_vm10, %v2834_v7, %v2827_v9  ;;  %v3435_v7 = vld [vmem:[%s4984_s22 + $0x80] sm:$0xff] }
0x194d   :  { %3824 = vmatprep.mubr.msk.f32.mxu1 %vm220_vm4, %v2836_v11  ;;  %v3430_v9 = vld [vmem:[%s4983_s21 + $0x1] ss:$0 sm:$0xff] }
0x194e   :  { %3825 = vmatmul.mubr.msk.f32.vlgmr.msra.gmra.mxu1 %vm220_vm4, %v2837_v12 }
0x194f   :  { %3839 = vmatpush3.msra.mxu1 %v3450_v55 }
0x1950   :  { %3840 = vmatprep.subr.mxu1 %v3449_v6 }
0x1951   :  { %3841 = vmatpush3.msra.mxu1 %v3449_v6 }
0x1952   :  { %3842 = vmatprep.subr.mxu1 %v3448_v63 }
0x1953   :  { %3843 = vmatpush3.msra.mxu1 %v3448_v63 }
0x1954   :  { %3844 = vmatprep.subr.mxu1 %v3447_v57 }
0x1955   :  { %3845 = vmatpush3.msra.mxu1 %v3447_v57 }
0x1956   :  { %3846 = vmatprep.subr.mxu1 %v3446_v58 }
0x1957   :  { %3847 = vmatpush3.msra.mxu1 %v3446_v58 }
0x1958   :  { %3848 = vmatprep.subr.mxu1 %v3445_v2 }
0x1959   :  { %3849 = vmatpush3.msra.mxu1 %v3445_v2 }
0x195a   :  { %3850 = vmatprep.subr.mxu1 %v3444_v59 }
0x195b   :  { %3851 = vmatpush3.msra.mxu1 %v3444_v59 }
0x195c   :  { %3852 = vmatprep.subr.mxu1 %v3443_v60 }
0x195d   :  { %3853 = vmatpush3.msra.mxu1 %v3443_v60 }
0x195e   :  { %3854 = vmatprep.subr.mxu1 %v3442_v61 }
0x195f   :  { %3855 = vmatpush3.msra.mxu1 %v3442_v61 }
0x1960   :  { %3856 = vmatprep.subr.mxu1 %v3441_v62 }
0x1961   :  { %3857 = vmatpush3.msra.mxu1 %v3441_v62 }
0x1962   :  { %3858 = vmatprep.subr.mxu1 %v3440_v5 }
0x1963   :  { %3859 = vmatpush3.msra.mxu1 %v3440_v5 }
0x1964   :  { %3860 = vmatprep.subr.mxu1 %v3439_v8 }
0x1965   :  { %3861 = vmatpush3.msra.mxu1 %v3439_v8 }
0x1966   :  { %3862 = vmatprep.subr.mxu1 %v3438_v0 }
0x1967   :  { %3863 = vmatpush3.msra.mxu1 %v3438_v0 }
0x1968   :  { %3864 = vmatprep.subr.mxu1 %v3437_v3 }
0x1969   :  { %3865 = vmatpush3.msra.mxu1 %v3437_v3 }
0x196a   :  { %3866 = vmatprep.subr.mxu1 %v3436_v4 }
0x196b   :  { %3867 = vmatpush3.msra.mxu1 %v3436_v4 }
0x196c   :  { %3868 = vmatprep.subr.mxu1 %v3435_v7 }
0x196d   :  { %3869 = vmatpush3.msra.mxu1 %v3435_v7 }
0x1a0e   :  { %v3826_v14 = vpop.f32.mrf.mxu1 }
0x1a0f   :  { %v2925_v27 = vadd.f32 %v3826_v14, %v4643_v13 }
0x1a10   :  { %v2915_v15 = vpop.f32.mrf.mxu1 }
0x1a11   :  { %v4840_v17 = vadd.f32 %v3420_v28, %v2925_v27  ;;  %v2924_v32 = vadd.f32 %v2915_v15, %v4645_v16 }
0x1a13   :  { %v4843_v34 = vadd.f32 %v3420_v28, %v2924_v32  ;;  %v2943_v18 = vsel %vm220_vm4, %v4840_v17, 0.0  ;;  %v2949_v13 = vmul.f32 %v4840_v17, %v4840_v17 }
0x1a14   :  { %2944 = vadd.xlane.f32.xlu0 %v2943_v18 }
0x1a15   :  { %v2940_v19 = vsel %vm220_vm4, %v4843_v34, 0.0  ;;  %v2948_v20 = vmul.f32 %v4843_v34, %v4843_v34  ;;  %v2953_v16 = vsel %vm220_vm4, %v2949_v13, 0.0 }
0x1a16   :  { %2941 = vadd.xlane.f32.xlu1 %v2940_v19 }
0x1a17   :  { %v2950_v21 = vsel %vm220_vm4, %v2948_v20, 0.0 }
0x1a18   :  { %2951 = vadd.xlane.f32.xlu0 %v2950_v21 }
0x1a1a   :  { %2954 = vadd.xlane.f32.xlu1 %v2953_v16 }
0x1a9d   :  { %v2945_v39 = vpop.xlane.xlu0 %2944 }
0x1a9e   :  { %v2947_v33 = vmul.f32 0.03125, %v2945_v39 }
0x1a9f   :  { %v2942_v38 = vpop.xlane.xlu1 %2941 }
0x1aa0   :  { %v2946_v35 = vmul.f32 0.03125, %v2942_v38  ;;  %v2959_v24 = vmul.f32 %v2947_v33, %v2947_v33  ;;  %v2963_v30 = vsub.f32 %v4840_v17, %v2947_v33 }
0x1aa1   :  { %v2952_v36 = vpop.xlane.xlu0 %2951 }
0x1aa2   :  { %v2958_v37 = vmul.f32 %v2946_v35, %v2946_v35  ;;  %v2956_v23 = vmul.f32 0.03125, %v2952_v36  ;;  %v2962_v46 = vsub.f32 %v4843_v34, %v2946_v35 }
0x1aa3   :  { %v2955_v40 = vpop.xlane.xlu1 %2954 }
0x1aa4   :  { %v2960_v41 = vsub.f32 %v2956_v23, %v2958_v37  ;;  %v2957_v42 = vmul.f32 0.03125, %v2955_v40 }
0x1aa6   :  { %v2964_v43 = vadd.f32 1e-05, %v2960_v41  ;;  %v2961_v44 = vsub.f32 %v2957_v42, %v2959_v24  ;;  %v3239_v42 = vld [vmem:[%s4988_s26 + $0x18] sm:$0xff] }
0x1aa8   :  { %3992 = vrsqrt.f32 %v2964_v43  ;;  %v2965_v45 = vadd.f32 1e-05, %v2961_v44  ;;  %v3236_v43 = vld [vmem:[%s4988_s26] sm:$0xff] }
0x1aaa   :  { %3994 = vrsqrt.f32 %v2965_v45 }
0x1ab5   :  { %v3993_v47 = vpop.eup %3992 }
0x1ab6   :  { %v2968_v49 = vmul.f32 %v3993_v47, %v2962_v46 }
0x1ab7   :  { %v3995_v31 = vpop.eup %3994 }
0x1ab8   :  { %v2969_v51 = vmul.f32 %v3995_v31, %v2963_v30  ;;  %v2976_v52 = vmul.f32 %v3423_v48, %v2968_v49 }
0x1aba   :  { %v2977_v56 = vmul.f32 %v3423_v48, %v2969_v51  ;;  %v2984_v53 = vadd.f32 %v3424_v50, %v2976_v52  ;;  %v3453_v51 = vld [vmem:[%s4986_s24] ss:$0 sm:$0xff] }
0x1abc   :  { %v2985_v54 = vadd.f32 %v3424_v50, %v2977_v56  ;;  %3835 = vmatprep.mubr.msk.f32.mxu0 %vm220_vm4, %v2984_v53 }
0x1abe   :  { %3836 = vmatmul.mubr.msk.f32.vlgmr.msra.gmra.mxu0 %vm220_vm4, %v2985_v54 }
0x1abf   :  { %3881 = vmatprep.mubr.msk.f32.mxu0 %vm4033_vm0, %v4032_v1  ;;  %3874 = vmatpush3.msra.mxu0 %v3239_v42 }
0x1ac0   :  { %3875 = vmatprep.subr.mxu0 %v4032_v1 }
0x1b7e   :  { %v3837_v10 = vpop.f32.mrf.mxu0 }
0x1b7f   :  { %v3077_v11 = vadd.f32 %v3837_v10, %v3430_v9 }
0x1b80   :  { %v3071_v12 = vpop.f32.mrf.mxu0 }
0x1b81   :  { %v3434_v14 = vmul.f32 -1.702, %v3077_v11  ;;  %v3072_v28 = vadd.f32 %v3430_v9, %v3071_v12 }
0x1b83   :  { %v3086_v27 = vmul.f32 1.442695, %v3434_v14  ;;  %v3433_v15 = vmul.f32 -1.702, %v3072_v28 }
0x1b85   :  { %3996 = vpow2.f32 %v3086_v27  ;;  %v3084_v32 = vmul.f32 1.442695, %v3433_v15 }
0x1b87   :  { %3998 = vpow2.f32 %v3084_v32 }
0x1b92   :  { %v3997_v18 = vpop.eup %3996 }
0x1b93   :  { %v3089_v19 = vadd.f32 1.0, %v3997_v18 }
0x1b94   :  { %v3999_v20 = vpop.eup %3998 }
0x1b95   :  { %v3088_v13 = vadd.f32 1.0, %v3999_v20  ;;  %4000 = vrcp.f32 %v3089_v19 }
0x1b97   :  { %4002 = vrcp.f32 %v3088_v13 }
0x1ba2   :  { %v4001_v21 = vpop.eup %4000 }
0x1ba3   :  { %v3095_v25 = vmul.f32 %v4001_v21, %v3077_v11 }
0x1ba4   :  { %v4003_v16 = vpop.eup %4002 }
0x1ba5   :  { %v3094_v22 = vmul.f32 %v4003_v16, %v3072_v28 }
0x1ba7   :  { %3870 = vmatprep.mubr.f32.mxu1 %v3094_v22 }
0x1ba8   :  { %3871 = vmatmul.mubr.f32.vlgmr.msra.gmra.mxu1 %v3095_v25 }
0x1c68   :  { %v3872_v26 = vpop.f32.mrf.mxu1 }
0x1c69   :  { %v3189_v39 = vadd.f32 %v3872_v26, %v4840_v17  ;;  %v3238_v17 = vld [vmem:[%s4988_s26 + $0x10] sm:$0xff] }
0x1c6a   :  { %v3179_v38 = vpop.f32.mrf.mxu1  ;;  %3876 = vmatpush3.msra.mxu0 %v3238_v17 }
0x1c6b   :  { %v3199_v33 = vadd.f32 %v3452_v29, %v3189_v39  ;;  %v3188_v35 = vadd.f32 %v3179_v38, %v4843_v34  ;;  %v3237_v34 = vld [vmem:[%s4988_s26 + $0x8] sm:$0xff]  ;;  %3877 = vmatprep.subr.mxu0 %v4032_v1 }
0x1c6c   :  { %3878 = vmatpush3.msra.mxu0 %v3237_v34 }
0x1c6d   :  { %v3201_v36 = vrot.slane %v3199_v33, 7  ;;  %v3198_v37 = vadd.f32 %v3452_v29, %v3188_v35  ;;  %3879 = vmatprep.subr.mxu0 %v4032_v1  ;;  %v3454_v1 = vld [vmem:[%s4987_s25] ss:$0 sm:$0xff] }
0x1c6e   :  { %3880 = vmatpush3.msra.mxu0 %v3236_v43 }
0x1c6f   :  { %v3203_v23 = vsel %vm339_vm6, %v3198_v37, %v3201_v36 }
0x1c70   :  { %v3207_v40 = vsel %vm3206_vm13, %v3203_v23, 0.0  ;;  %v3211_v24 = vmul.f32 %v3203_v23, %v3203_v23 }
0x1c71   :  { %3208 = vadd.xlane.f32.xlu0 %v3207_v40 }
0x1c72   :  { %v3212_v41 = vsel %vm3206_vm13, %v3211_v24, 0.0 }
0x1c73   :  { %3213 = vadd.xlane.f32.xlu1 %v3212_v41 }
0x1cfa   :  { %v3209_v44 = vpop.xlane.xlu0 %3208 }
0x1cfb   :  { %v3210_v45 = vmul.f32 0.03125, %v3209_v44 }
0x1cfc   :  { %v3214_v46 = vpop.xlane.xlu1 %3213 }
0x1cfd   :  { %v3216_v47 = vmul.f32 %v3210_v45, %v3210_v45  ;;  %v3215_v48 = vmul.f32 0.03125, %v3214_v46  ;;  %v3218_v31 = vsub.f32 %v3203_v23, %v3210_v45 }
0x1cff   :  { %v3217_v30 = vsub.f32 %v3215_v48, %v3216_v47 }
0x1d01   :  { %v3219_v49 = vadd.f32 1e-05, %v3217_v30 }
0x1d03   :  { %4004 = vrsqrt.f32 %v3219_v49 }
0x1d10   :  { %v4005_v50 = vpop.eup %4004 }
0x1d11   :  { %v3221_v52 = vmul.f32 %v4005_v50, %v3218_v31 }
0x1d13   :  { %v3228_v56 = vmul.f32 %v3453_v51, %v3221_v52 }
0x1d15   :  { %v3235_v53 = vadd.f32 %v3454_v1, %v3228_v56 }
0x1d17   :  { %3882 = vmatmul.mubr.msk.f32.vlgmr.msra.gmra.mxu0 %vm220_vm4, %v3235_v53 }
0x1dd7   :  { %v3309_v54 = vpop.f32.mrf.mxu0 }
0x1dd8   :  { %3314 = vst.msk [vmem:[#allocation2] sm:$0x3] %vm3313_vm14, %v3309_v54 }
0x1dd9   :  { %v3883_v55 = vpop.f32.mrf.mxu0 }
0x1dda   :  { %4021 = shalt.err (!%p4018_p4)
}
0x1ddb   :  { %3324 = dma.vmem_to_hbm [thread:$0]  %s3322_s1, 32, %s4989_s27, [#allocation3]  }
0x1ddc   :  { %4030 = dma.done.wait [#allocation3], 32  }
0x1ddd   :  { %4031 = vsyncadd [#allocation3], 4294967264 }
0x1dde   :  { %3328 = vsyncpa [#allocation3], 1 }

</bundles_post_ra>
